<compile_context>
chip_gen: v6e
topology: v6e:2x2x1
jax: 0.10.0
libtpu: 0.0.40
codegen_flags: <defaults>
</compile_context>

<pallas_src>
import functools

import jax
import jax.numpy as jnp
from jax import lax
from jax.experimental import pallas as pl
from jax.experimental.pallas import tpu as pltpu


# Dtype fed to the MXU for the two conv matmuls.  Per the perf review, on
# v6e/v7x set this to jnp.bfloat16 for full-rate MXU (and loosen the test
# tolerance to ~1e-2); kept at f32 here so the strict 2e-4 check against the
# f32 reference holds on every chip.  All BN / ReLU / rsqrt math stays f32.
MXU_DTYPE = jnp.float32


def _round_up(x, m):
    return -(-x // m) * m


# ----------------------------------------------------------------------------
# Helper: 1-D bilinear interpolation matrix (align_corners=True), wrapper-side.
# ----------------------------------------------------------------------------
def _interp_matrix(l_in, l_out):
    idx = jnp.arange(l_out, dtype=jnp.float32)
    src = idx * (l_in - 1) / (l_out - 1)
    i0 = jnp.clip(jnp.floor(src).astype(jnp.int32), 0, l_in - 1)
    i1 = jnp.minimum(i0 + 1, l_in - 1)
    w1 = src - i0.astype(jnp.float32)
    w0 = 1.0 - w1
    m = jnp.zeros((l_out, l_in), dtype=jnp.float32)
    m = m.at[jnp.arange(l_out), i0].add(w0)
    m = m.at[jnp.arange(l_out), i1].add(w1)
    return m


# ----------------------------------------------------------------------------
# Fused kernel: assemble concat buffer -> conv1 -> BN1+ReLU -> conv2 ->
#               BN2+ReLU -> single lane-dense store.
# ----------------------------------------------------------------------------
def _fused_up_kernel(xcat_ref, mask1_ref, mask2_ref,
                     w1_ref, b1_ref, g1_ref, be1_ref,
                     w2_ref, b2_ref, g2_ref, be2_ref,
                     o_ref, ze_ref, *, nb, sp, spb, gap, mar1, wp, n_valid):
    f32 = jnp.float32
    inv_n = 1.0 / n_valid
    w2dom = nb * spb                # conv2 / output domain width (128-aligned)
    w1dom = w2dom + 2 * mar1        # conv1 domain width (128-aligned)

    # ---- (1) assemble the zero-haloed, lane-aligned concat([x2, x1u]) buffer
    #      in VMEM: zero-fill + one contiguous lane-slice copy per batch image
    #      (structured copies; no dense embed matmul).
    ze_ref[...] = jnp.zeros_like(ze_ref)
    for b in range(nb):
        base = gap + b * spb
        ze_ref[:, base:base + sp] = xcat_ref[b]
    ze = ze_ref[...]

    offs = [(dy - 1) * wp + (dx - 1) for dy in range(3) for dx in range(3)]

    def conv3x3(x, width, w_ref_, bias_ref_):
        # 3x3 "SAME" conv on the flattened spatial axis: 9 statically shifted
        # lane slices -> sublane-tile-aligned im2col concat -> one MXU matmul
        # with K = 9 * C_pad.  The 1-px zero halo emulates padding=1.
        cols = jnp.concatenate(
            [x[:, mar1 + o: mar1 + o + width] for o in offs], axis=0)
        return (jnp.dot(w_ref_[...].astype(MXU_DTYPE), cols.astype(MXU_DTYPE),
                        preferred_element_type=f32) + bias_ref_[...])

    def bn_relu(x, mask, g_ref_, be_ref_):
        # Training-mode BatchNorm (batch stats over the valid N*H*W positions,
        # biased variance, eps=1e-5) fused with ReLU on the f32 accumulator.
        xm = x * mask
        mean = jnp.sum(xm, axis=1, keepdims=True) * inv_n
        diff = (x - mean) * mask
        var = jnp.sum(diff * diff, axis=1, keepdims=True) * inv_n
        y = diff * (lax.rsqrt(var + 1e-5) * g_ref_[...]) + be_ref_[...]
        return jnp.maximum(y, 0.0)

    # conv1 + BN1 + ReLU over a (Wp+1)-margined, 128-aligned domain; the
    # trailing mask re-zeroes the halo lanes so conv2 sees SAME zero padding.
    h1 = bn_relu(conv3x3(ze, w1dom, w1_ref, b1_ref),
                 mask1_ref[...], g1_ref, be1_ref) * mask1_ref[...]

    # conv2 + BN2 + ReLU over the per-batch aligned output domain.  No
    # trailing mask: halo lanes are stripped by the wrapper slice.
    h2 = bn_relu(conv3x3(h1, w2dom, w2_ref, b2_ref),
                 mask2_ref[...], g2_ref, be2_ref)

    # ---- (2) one contiguous, lane-dense (CoutP x B*SPB) store.
    o_ref[...] = h2


# ----------------------------------------------------------------------------
# Wrapper: tiny shape-only constants + one fused pallas_call.
# ----------------------------------------------------------------------------
@jax.jit
def up_forward(x1, x2, params):
    B, C1, H1, W1 = x1.shape
    _, C2, H2, W2 = x2.shape
    Cin = C1 + C2
    Cmid = params["w1"].shape[-1]
    Cout = params["w2"].shape[-1]
    H1u, W1u = 2 * H1, 2 * W1
    diffY, diffX = H2 - H1u, W2 - W1u
    Hp, Wp = H2 + 2, W2 + 2                  # 1-px conv halo each side
    Sp = Hp * Wp                             # flattened per-image size
    SPB = _round_up(Sp, 128)                 # lane-aligned per-batch block
    MAR1 = _round_up(Wp + 1, 128)            # conv-tap margin, lane-aligned
    GAP = 2 * MAR1                           # front/back zero margin
    TOT = 2 * GAP + B * SPB                  # concat-buffer width
    W2DOM = B * SPB
    CinP = _round_up(Cin, 8)
    CmidP = _round_up(Cmid, 8)
    CoutP = _round_up(Cout, 8)
    f32 = jnp.float32

    # --- x1: bilinear x2 upsample (align_corners=True) + F.pad alignment +
    #     1-px conv halo, via two tiny separable interpolation matrices
    #     (shape-only constants; replaces the old dense spatial embed matmul).
    A = _interp_matrix(H1, H1u)
    Bm = _interp_matrix(W1, W1u)
    A_full = jnp.pad(A, ((1 + diffY // 2, Hp - 1 - diffY // 2 - H1u), (0, 0)))
    B_full = jnp.pad(Bm, ((1 + diffX // 2, Wp - 1 - diffX // 2 - W1u), (0, 0)))
    x1p = jnp.einsum("ph,bchw,qw->bcpq", A_full, x1.astype(f32), B_full)
    x1p = x1p.reshape(B, C1, Sp)

    # --- x2: 1-px zero halo, flattened.
    x2p = jnp.pad(x2.astype(f32), ((0, 0), (0, 0), (1, 1), (1, 1)))
    x2p = x2p.reshape(B, C2, Sp)

    # --- channel concat [x2 ; x1] (torch.cat order) + pad channels to x8.
    xcat = jnp.concatenate([x2p, x1p], axis=1)
    xcat = jnp.pad(xcat, ((0, 0), (0, CinP - Cin), (0, 0)))

    # --- interior masks over the conv1 / conv2 domains (shape-only consts).
    mimg = jnp.pad(jnp.ones((H2, W2), f32), ((1, 1), (1, 1))).reshape(Sp)
    mask2 = jnp.tile(jnp.pad(mimg, (0, SPB - Sp)), B).reshape(1, W2DOM)
    mask1 = jnp.pad(mask2, ((0, 0), (MAR1, MAR1)))

    # --- conv weights as (CoutP, 9*CinP) im2col matrices; BN params as cols.
    def tap_matrix(w_hwio, cin_p, cout_p):
        kh, kw, ci, co = w_hwio.shape
        w = jnp.pad(w_hwio.astype(f32),
                    ((0, 0), (0, 0), (0, cin_p - ci), (0, cout_p - co)))
        return jnp.transpose(w, (3, 0, 1, 2)).reshape(cout_p, kh * kw * cin_p)

    def col(v, n):
        return jnp.pad(v.astype(f32), (0, n - v.shape[0])).reshape(n, 1)

    w1m = tap_matrix(params["w1"], CinP, CmidP)
    w2m = tap_matrix(params["w2"], CmidP, CoutP)
    b1, g1, be1 = (col(params[k], CmidP) for k in ("b1", "g1", "beta1"))
    b2, g2, be2 = (col(params[k], CoutP) for k in ("b2", "g2", "beta2"))

    kernel = functools.partial(
        _fused_up_kernel, nb=B, sp=Sp, spb=SPB, gap=GAP, mar1=MAR1, wp=Wp,
        n_valid=B * H2 * W2)

    # TODO(synk): v7x dual-TensorCore split (batch/core_map with a cross-core
    # BN-stat reduction through CMEM) is not implemented; this single fused
    # call runs on one TensorCore.
    out = pl.pallas_call(
        kernel,
        out_shape=jax.ShapeDtypeStruct((CoutP, W2DOM), f32),
        in_specs=[pl.BlockSpec(memory_space=pltpu.MemorySpace.VMEM)] * 11,
        out_specs=pl.BlockSpec(memory_space=pltpu.MemorySpace.VMEM),
        scratch_shapes=[pltpu.VMEM((CinP, TOT), f32)],
        compiler_params=pltpu.CompilerParams(
            vmem_limit_bytes=16 * 1024 * 1024),
    )(xcat, mask1, mask2, w1m, b1, g1, be1, w2m, b2, g2, be2)

    # Strip the conv halo / lane-alignment padding (wrapper-side reshape+slice,
    # per review item #6 option B).
    out = out.reshape(CoutP, B, SPB)[:, :, :Sp].reshape(CoutP, B, Hp, Wp)
    out = out[:Cout, :, 1:1 + H2, 1:1 + W2]
    return jnp.transpose(out, (1, 0, 2, 3))


# ----------------------------------------------------------------------------
# Pure-JAX reference (same math) for the correctness check.
# ----------------------------------------------------------------------------
def up_forward_ref(x1, x2, params):
    _, _, H, W = x1.shape
    A = _interp_matrix(H, 2 * H)
    Bm = _interp_matrix(W, 2 * W)
    x1u = jnp.einsum("ph,bchw,qw->bcpq", A, x1, Bm)
    diffY = x2.shape[2] - x1u.shape[2]
    diffX = x2.shape[3] - x1u.shape[3]
    x1u = jnp.pad(x1u, ((0, 0), (0, 0),
                        (diffY // 2, diffY - diffY // 2),
                        (diffX // 2, diffX - diffX // 2)))
    x = jnp.concatenate([x2, x1u], axis=1)
    x = jnp.transpose(x, (0, 2, 3, 1))

    def conv(x, w, b):
        return lax.conv_general_dilated(
            x, w, window_strides=(1, 1), padding="SAME",
            dimension_numbers=("NHWC", "HWIO", "NHWC")) + b

    def bn_relu(x, g, bet):
        mean = jnp.mean(x, axis=(0, 1, 2), keepdims=True)
        var = jnp.mean(jnp.square(x - mean), axis=(0, 1, 2), keepdims=True)
        return jnp.maximum((x - mean) * lax.rsqrt(var + 1e-5) * g + bet, 0.0)

    y = bn_relu(conv(x, params["w1"], params["b1"]), params["g1"], params["beta1"])
    y = bn_relu(conv(y, params["w2"], params["b2"]), params["g2"], params["beta2"])
    return jnp.transpose(y, (0, 3, 1, 2))


if __name__ == "__main__":
    # Up(in_channels=8, out_channels=4, bilinear=True)  -> mid_channels = 4
    in_channels, out_channels = 8, 4
    mid_channels = in_channels // 2
    B = 2
    c1 = in_channels // 2   # channels of x1 (deep feature, upsampled)
    c2 = in_channels - c1   # channels of x2 (skip connection)

    key = jax.random.PRNGKey(0)
    ks = jax.random.split(key, 8)

    x1 = jax.random.normal(ks[0], (B, c1, 8, 8), dtype=jnp.float32)
    x2 = jax.random.normal(ks[1], (B, c2, 16, 16), dtype=jnp.float32)

    # Deterministic synthetic parameters (HWIO conv weights).
    params = {
        "w1": 0.1 * jax.random.normal(ks[2], (3, 3, in_channels, mid_channels), jnp.float32),
        "b1": 0.05 * jax.random.normal(ks[3], (mid_channels,), jnp.float32),
        "g1": jnp.ones((mid_channels,), jnp.float32) + 0.1,
        "beta1": jnp.full((mid_channels,), 0.05, jnp.float32),
        "w2": 0.1 * jax.random.normal(ks[4], (3, 3, mid_channels, out_channels), jnp.float32),
        "b2": 0.05 * jax.random.normal(ks[5], (out_channels,), jnp.float32),
        "g2": jnp.ones((out_channels,), jnp.float32) - 0.1,
        "beta2": jnp.full((out_channels,), -0.02, jnp.float32),
    }

    out = jax.block_until_ready(up_forward(x1, x2, params))
    ref = jax.block_until_ready(up_forward_ref(x1, x2, params))

    assert out.shape == (B, out_channels, 16, 16), out.shape
    assert bool(jnp.all(jnp.isfinite(out)))
    max_err = float(jnp.max(jnp.abs(out - ref)))
    assert jnp.allclose(out, ref, atol=2e-4, rtol=2e-4), max_err

    # TODO(synk): bilinear=False (ConvTranspose2d) branch of `Up` is not implemented.
    print("KERNEL_OK")
</pallas_src>

<mosaic_0001>
module attributes {stable_mosaic.version = 11 : i64} {
  func.func private @main(%arg0: i32) attributes {dimension_semantics = [#tpu.dimension_semantics<core_parallel>], iteration_bounds = array<i64: 2>, tpu.core_type = #tpu.core_type<sc_scalar_subcore>, window_params = []} {
    return
  }
}

module attributes {stable_mosaic.version = 11 : i64} {
  func.func private @main(%arg0: i32) attributes {dimension_semantics = [#tpu.dimension_semantics<core_parallel>], iteration_bounds = array<i64: 2>, tpu.core_type = #tpu.core_type<sc_scalar_subcore>, window_params = []} {
    return
  }
}

module attributes {stable_mosaic.version = 11 : i64} {
  func.func @_fused_up_kernel(%arg0: memref<2x8x324xf32, #tpu.memory_space<vmem>>, %arg1: memref<1x1024xf32, #tpu.memory_space<vmem>>, %arg2: memref<1x768xf32, #tpu.memory_space<vmem>>, %arg3: memref<8x72xf32, #tpu.memory_space<vmem>>, %arg4: memref<8x1xf32, #tpu.memory_space<vmem>>, %arg5: memref<8x1xf32, #tpu.memory_space<vmem>>, %arg6: memref<8x1xf32, #tpu.memory_space<vmem>>, %arg7: memref<8x72xf32, #tpu.memory_space<vmem>>, %arg8: memref<8x1xf32, #tpu.memory_space<vmem>>, %arg9: memref<8x1xf32, #tpu.memory_space<vmem>>, %arg10: memref<8x1xf32, #tpu.memory_space<vmem>>, %arg11: memref<8x768xf32, #tpu.memory_space<vmem>>, %arg12: memref<8x1280xf32, #tpu.memory_space<vmem>>) attributes {dimension_semantics = [], scalar_prefetch = 0 : i64, scratch_operands = 1 : i64, tpu.core_type = #tpu.core_type<tc>} {
    %cst = arith.constant 0.000000e+00 : f32
    %0 = vector.broadcast %cst : f32 to vector<8x1280xf32>
    %c0 = arith.constant 0 : index
    %c0_0 = arith.constant 0 : index
    %1 = vector.load %arg12[%c0, %c0_0] : memref<8x1280xf32, #tpu.memory_space<vmem>>, vector<8x1280xf32>
    tpu.vector_store %arg12[%c0, %c0_0], %0 {strides = array<i32>} : memref<8x1280xf32, #tpu.memory_space<vmem>>, vector<8x1280xf32>,
    %c0_1 = arith.constant 0 : index
    %c0_2 = arith.constant 0 : index
    %c0_3 = arith.constant 0 : index
    %2 = vector.load %arg0[%c0_1, %c0_2, %c0_3] : memref<2x8x324xf32, #tpu.memory_space<vmem>>, vector<1x8x324xf32>
    %3 = vector.shape_cast %2 : vector<1x8x324xf32> to vector<8x324xf32>
    %c0_4 = arith.constant 0 : index
    %c256 = arith.constant 256 : index
    %4 = vector.load %arg12[%c0_4, %c256] : memref<8x1280xf32, #tpu.memory_space<vmem>>, vector<8x324xf32>
    tpu.vector_store %arg12[%c0_4, %c256], %3 {strides = array<i32>} : memref<8x1280xf32, #tpu.memory_space<vmem>>, vector<8x324xf32>,
    %c1 = arith.constant 1 : index
    %c0_5 = arith.constant 0 : index
    %c0_6 = arith.constant 0 : index
    %5 = vector.load %arg0[%c1, %c0_5, %c0_6] : memref<2x8x324xf32, #tpu.memory_space<vmem>>, vector<1x8x324xf32>
    %6 = vector.shape_cast %5 : vector<1x8x324xf32> to vector<8x324xf32>
    %c0_7 = arith.constant 0 : index
    %c640 = arith.constant 640 : index
    %7 = vector.load %arg12[%c0_7, %c640] : memref<8x1280xf32, #tpu.memory_space<vmem>>, vector<8x324xf32>
    tpu.vector_store %arg12[%c0_7, %c640], %6 {strides = array<i32>} : memref<8x1280xf32, #tpu.memory_space<vmem>>, vector<8x324xf32>,
    %c0_8 = arith.constant 0 : index
    %c0_9 = arith.constant 0 : index
    %8 = vector.load %arg12[%c0_8, %c0_9] : memref<8x1280xf32, #tpu.memory_space<vmem>>, vector<8x1280xf32>
    %9 = vector.extract_strided_slice %8 {offsets = [0, 109], sizes = [8, 1024], strides = [1, 1]} : vector<8x1280xf32> to vector<8x1024xf32>
    %10 = vector.extract_strided_slice %8 {offsets = [0, 110], sizes = [8, 1024], strides = [1, 1]} : vector<8x1280xf32> to vector<8x1024xf32>
    %11 = vector.extract_strided_slice %8 {offsets = [0, 111], sizes = [8, 1024], strides = [1, 1]} : vector<8x1280xf32> to vector<8x1024xf32>
    %12 = vector.extract_strided_slice %8 {offsets = [0, 127], sizes = [8, 1024], strides = [1, 1]} : vector<8x1280xf32> to vector<8x1024xf32>
    %13 = vector.extract_strided_slice %8 {offsets = [0, 128], sizes = [8, 1024], strides = [1, 1]} : vector<8x1280xf32> to vector<8x1024xf32>
    %14 = vector.extract_strided_slice %8 {offsets = [0, 129], sizes = [8, 1024], strides = [1, 1]} : vector<8x1280xf32> to vector<8x1024xf32>
    %15 = vector.extract_strided_slice %8 {offsets = [0, 145], sizes = [8, 1024], strides = [1, 1]} : vector<8x1280xf32> to vector<8x1024xf32>
    %16 = vector.extract_strided_slice %8 {offsets = [0, 146], sizes = [8, 1024], strides = [1, 1]} : vector<8x1280xf32> to vector<8x1024xf32>
    %17 = vector.extract_strided_slice %8 {offsets = [0, 147], sizes = [8, 1024], strides = [1, 1]} : vector<8x1280xf32> to vector<8x1024xf32>
    %18 = tpu.concatenate %9, %10, %11, %12, %13, %14, %15, %16, %17 in 0 : vector<8x1024xf32>, vector<8x1024xf32>, vector<8x1024xf32>, vector<8x1024xf32>, vector<8x1024xf32>, vector<8x1024xf32>, vector<8x1024xf32>, vector<8x1024xf32>, vector<8x1024xf32> -> vector<72x1024xf32>
    %c0_10 = arith.constant 0 : index
    %c0_11 = arith.constant 0 : index
    %19 = vector.load %arg3[%c0_10, %c0_11] : memref<8x72xf32, #tpu.memory_space<vmem>>, vector<8x72xf32>
    %cst_12 = arith.constant dense<0.000000e+00> : vector<8x1024xf32>
    %20 = tpu.matmul %19, %18, %cst_12 {dimension_numbers = #tpu.dot_dimension_numbers<[1], [0], [0], [1], [0, 0, 1, 1], [], []>} : vector<8x72xf32>, vector<72x1024xf32>, vector<8x1024xf32> -> vector<8x1024xf32>
    %c0_13 = arith.constant 0 : index
    %c0_14 = arith.constant 0 : index
    %21 = vector.load %arg4[%c0_13, %c0_14] : memref<8x1xf32, #tpu.memory_space<vmem>>, vector<8x1xf32>
    %22 = vector.broadcast %21 : vector<8x1xf32> to vector<8x1024xf32>
    %23 = arith.addf %20, %22 : vector<8x1024xf32>
    %c0_15 = arith.constant 0 : index
    %c0_16 = arith.constant 0 : index
    %24 = vector.load %arg1[%c0_15, %c0_16] : memref<1x1024xf32, #tpu.memory_space<vmem>>, vector<1x1024xf32>
    %25 = vector.broadcast %24 : vector<1x1024xf32> to vector<8x1024xf32>
    %26 = arith.mulf %23, %25 : vector<8x1024xf32>
    %cst_17 = arith.constant dense<0.000000e+00> : vector<8xf32>
    %27 = vector.multi_reduction <add>, %26, %cst_17 [1] : vector<8x1024xf32> to vector<8xf32>
    %28 = vector.shape_cast %27 : vector<8xf32> to vector<8x1xf32>
    %cst_18 = arith.constant 0.001953125 : f32
    %29 = vector.broadcast %cst_18 : f32 to vector<8x1xf32>
    %30 = arith.mulf %28, %29 : vector<8x1xf32>
    %31 = vector.broadcast %30 : vector<8x1xf32> to vector<8x1024xf32>
    %32 = arith.subf %23, %31 : vector<8x1024xf32>
    %33 = vector.broadcast %24 : vector<1x1024xf32> to vector<8x1024xf32>
    %34 = arith.mulf %32, %33 : vector<8x1024xf32>
    %35 = arith.mulf %34, %34 : vector<8x1024xf32>
    %cst_19 = arith.constant dense<0.000000e+00> : vector<8xf32>
    %36 = vector.multi_reduction <add>, %35, %cst_19 [1] : vector<8x1024xf32> to vector<8xf32>
    %37 = vector.shape_cast %36 : vector<8xf32> to vector<8x1xf32>
    %cst_20 = arith.constant 0.001953125 : f32
    %38 = vector.broadcast %cst_20 : f32 to vector<8x1xf32>
    %39 = arith.mulf %37, %38 : vector<8x1xf32>
    %cst_21 = arith.constant 9.99999974E-6 : f32
    %40 = vector.broadcast %cst_21 : f32 to vector<8x1xf32>
    %41 = arith.addf %39, %40 : vector<8x1xf32>
    %42 = math.rsqrt %41 : vector<8x1xf32>
    %c0_22 = arith.constant 0 : index
    %c0_23 = arith.constant 0 : index
    %43 = vector.load %arg5[%c0_22, %c0_23] : memref<8x1xf32, #tpu.memory_space<vmem>>, vector<8x1xf32>
    %44 = arith.mulf %42, %43 : vector<8x1xf32>
    %45 = vector.broadcast %44 : vector<8x1xf32> to vector<8x1024xf32>
    %46 = arith.mulf %34, %45 : vector<8x1024xf32>
    %c0_24 = arith.constant 0 : index
    %c0_25 = arith.constant 0 : index
    %47 = vector.load %arg6[%c0_24, %c0_25] : memref<8x1xf32, #tpu.memory_space<vmem>>, vector<8x1xf32>
    %48 = vector.broadcast %47 : vector<8x1xf32> to vector<8x1024xf32>
    %49 = arith.addf %46, %48 : vector<8x1024xf32>
    %cst_26 = arith.constant 0.000000e+00 : f32
    %50 = vector.broadcast %cst_26 : f32 to vector<8x1024xf32>
    %51 = arith.maximumf %49, %50 : vector<8x1024xf32>
    %c0_27 = arith.constant 0 : index
    %c0_28 = arith.constant 0 : index
    %52 = vector.load %arg1[%c0_27, %c0_28] : memref<1x1024xf32, #tpu.memory_space<vmem>>, vector<1x1024xf32>
    %53 = vector.broadcast %52 : vector<1x1024xf32> to vector<8x1024xf32>
    %54 = arith.mulf %51, %53 : vector<8x1024xf32>
    %55 = vector.extract_strided_slice %54 {offsets = [0, 109], sizes = [8, 768], strides = [1, 1]} : vector<8x1024xf32> to vector<8x768xf32>
    %56 = vector.extract_strided_slice %54 {offsets = [0, 110], sizes = [8, 768], strides = [1, 1]} : vector<8x1024xf32> to vector<8x768xf32>
    %57 = vector.extract_strided_slice %54 {offsets = [0, 111], sizes = [8, 768], strides = [1, 1]} : vector<8x1024xf32> to vector<8x768xf32>
    %58 = vector.extract_strided_slice %54 {offsets = [0, 127], sizes = [8, 768], strides = [1, 1]} : vector<8x1024xf32> to vector<8x768xf32>
    %59 = vector.extract_strided_slice %54 {offsets = [0, 128], sizes = [8, 768], strides = [1, 1]} : vector<8x1024xf32> to vector<8x768xf32>
    %60 = vector.extract_strided_slice %54 {offsets = [0, 129], sizes = [8, 768], strides = [1, 1]} : vector<8x1024xf32> to vector<8x768xf32>
    %61 = vector.extract_strided_slice %54 {offsets = [0, 145], sizes = [8, 768], strides = [1, 1]} : vector<8x1024xf32> to vector<8x768xf32>
    %62 = vector.extract_strided_slice %54 {offsets = [0, 146], sizes = [8, 768], strides = [1, 1]} : vector<8x1024xf32> to vector<8x768xf32>
    %63 = vector.extract_strided_slice %54 {offsets = [0, 147], sizes = [8, 768], strides = [1, 1]} : vector<8x1024xf32> to vector<8x768xf32>
    %64 = tpu.concatenate %55, %56, %57, %58, %59, %60, %61, %62, %63 in 0 : vector<8x768xf32>, vector<8x768xf32>, vector<8x768xf32>, vector<8x768xf32>, vector<8x768xf32>, vector<8x768xf32>, vector<8x768xf32>, vector<8x768xf32>, vector<8x768xf32> -> vector<72x768xf32>
    %c0_29 = arith.constant 0 : index
    %c0_30 = arith.constant 0 : index
    %65 = vector.load %arg7[%c0_29, %c0_30] : memref<8x72xf32, #tpu.memory_space<vmem>>, vector<8x72xf32>
    %cst_31 = arith.constant dense<0.000000e+00> : vector<8x768xf32>
    %66 = tpu.matmul %65, %64, %cst_31 {dimension_numbers = #tpu.dot_dimension_numbers<[1], [0], [0], [1], [0, 0, 1, 1], [], []>} : vector<8x72xf32>, vector<72x768xf32>, vector<8x768xf32> -> vector<8x768xf32>
    %c0_32 = arith.constant 0 : index
    %c0_33 = arith.constant 0 : index
    %67 = vector.load %arg8[%c0_32, %c0_33] : memref<8x1xf32, #tpu.memory_space<vmem>>, vector<8x1xf32>
    %68 = vector.broadcast %67 : vector<8x1xf32> to vector<8x768xf32>
    %69 = arith.addf %66, %68 : vector<8x768xf32>
    %c0_34 = arith.constant 0 : index
    %c0_35 = arith.constant 0 : index
    %70 = vector.load %arg2[%c0_34, %c0_35] : memref<1x768xf32, #tpu.memory_space<vmem>>, vector<1x768xf32>
    %71 = vector.broadcast %70 : vector<1x768xf32> to vector<8x768xf32>
    %72 = arith.mulf %69, %71 : vector<8x768xf32>
    %cst_36 = arith.constant dense<0.000000e+00> : vector<8xf32>
    %73 = vector.multi_reduction <add>, %72, %cst_36 [1] : vector<8x768xf32> to vector<8xf32>
    %74 = vector.shape_cast %73 : vector<8xf32> to vector<8x1xf32>
    %cst_37 = arith.constant 0.001953125 : f32
    %75 = vector.broadcast %cst_37 : f32 to vector<8x1xf32>
    %76 = arith.mulf %74, %75 : vector<8x1xf32>
    %77 = vector.broadcast %76 : vector<8x1xf32> to vector<8x768xf32>
    %78 = arith.subf %69, %77 : vector<8x768xf32>
    %79 = vector.broadcast %70 : vector<1x768xf32> to vector<8x768xf32>
    %80 = arith.mulf %78, %79 : vector<8x768xf32>
    %81 = arith.mulf %80, %80 : vector<8x768xf32>
    %cst_38 = arith.constant dense<0.000000e+00> : vector<8xf32>
    %82 = vector.multi_reduction <add>, %81, %cst_38 [1] : vector<8x768xf32> to vector<8xf32>
    %83 = vector.shape_cast %82 : vector<8xf32> to vector<8x1xf32>
    %cst_39 = arith.constant 0.001953125 : f32
    %84 = vector.broadcast %cst_39 : f32 to vector<8x1xf32>
    %85 = arith.mulf %83, %84 : vector<8x1xf32>
    %cst_40 = arith.constant 9.99999974E-6 : f32
    %86 = vector.broadcast %cst_40 : f32 to vector<8x1xf32>
    %87 = arith.addf %85, %86 : vector<8x1xf32>
    %88 = math.rsqrt %87 : vector<8x1xf32>
    %c0_41 = arith.constant 0 : index
    %c0_42 = arith.constant 0 : index
    %89 = vector.load %arg9[%c0_41, %c0_42] : memref<8x1xf32, #tpu.memory_space<vmem>>, vector<8x1xf32>
    %90 = arith.mulf %88, %89 : vector<8x1xf32>
    %91 = vector.broadcast %90 : vector<8x1xf32> to vector<8x768xf32>
    %92 = arith.mulf %80, %91 : vector<8x768xf32>
    %c0_43 = arith.constant 0 : index
    %c0_44 = arith.constant 0 : index
    %93 = vector.load %arg10[%c0_43, %c0_44] : memref<8x1xf32, #tpu.memory_space<vmem>>, vector<8x1xf32>
    %94 = vector.broadcast %93 : vector<8x1xf32> to vector<8x768xf32>
    %95 = arith.addf %92, %94 : vector<8x768xf32>
    %cst_45 = arith.constant 0.000000e+00 : f32
    %96 = vector.broadcast %cst_45 : f32 to vector<8x768xf32>
    %97 = arith.maximumf %95, %96 : vector<8x768xf32>
    %c0_46 = arith.constant 0 : index
    %c0_47 = arith.constant 0 : index
    %98 = vector.load %arg11[%c0_46, %c0_47] : memref<8x768xf32, #tpu.memory_space<vmem>>, vector<8x768xf32>
    tpu.vector_store %arg11[%c0_46, %c0_47], %97 {strides = array<i32>} : memref<8x768xf32, #tpu.memory_space<vmem>>, vector<8x768xf32>,
    return
  }
}

</mosaic_0001>

<bundles_post_ra>
// kernel: up_forward.1
= control target key start
LH: loop header
LB: loop body
LE: loop exit
PB: predicated region body
PF: predicated region fallthrough
CT: control target
= control target key end

     0   :  { %vm53_vm0 = vcmask 556032   ;;  %v1888_v0 = vmov 0.0   ;;  %s1889_s29 = smov 91   ;;  %s1890_s30 = smov 90   ;;  %vm286_vm1 = vcmask 736256   ;;  %vm259_vm2 = vcmask 744448   ;;  %s3059_s0 = inlined_call_operand.vmem [shape: f32[2,8,324], index: 0, kind: input, shape index: {}]   ;;  %s3060_s4 = inlined_call_operand.vmem [shape: f32[8,1], index: 4, kind: input, shape index: {}]   ;;  %s3061_s6 = inlined_call_operand.vmem [shape: f32[8,1], index: 6, kind: input, shape index: {}]   ;;  %s3062_s3 = inlined_call_operand.vmem [shape: f32[8,72], index: 3, kind: input, shape index: {}]   ;;  %s3063_s1 = inlined_call_operand.vmem [shape: f32[1,1024], index: 1, kind: input, shape index: {}]   ;;  %s3064_s5 = inlined_call_operand.vmem [shape: f32[8,1], index: 5, kind: input, shape index: {}]   ;;  %s3065_s8 = inlined_call_operand.vmem [shape: f32[8,1], index: 8, kind: input, shape index: {}]   ;;  %s3066_s7 = inlined_call_operand.vmem [shape: f32[8,72], index: 7, kind: input, shape index: {}]   ;;  %s3067_s2 = inlined_call_operand.vmem [shape: f32[1,768], index: 2, kind: input, shape index: {}]   ;;  %s3068_s10 = inlined_call_operand.vmem [shape: f32[8,1], index: 10, kind: input, shape index: {}]   ;;  %s3069_s9 = inlined_call_operand.vmem [shape: f32[8,1], index: 9, kind: input, shape index: {}]   ;;  %s3070_s11 = inlined_call_operand.vmem [shape: f32[8,768], index: 11, kind: output, shape index: {}]  }
   0x1   :  { %39 = vst [vmem:[#allocation2 + $0x8] sm:$0xff] %v1888_v0  ;;  %42 = vst [vmem:[#allocation2 + $0x20] sm:$0xff] %v1888_v0  ;;  %v1965_v1 = vld [vmem:[%s3059_s0 + $0x8] sm:$0xff]  ;;  %v1970_v2 = vld [vmem:[%s3059_s0] sm:$0xff]  ;;  %677 = vmatprep.mubr.f32.mxu0 %v1888_v0  ;;  %748 = vmatprep.mubr.f32.mxu1 %v1888_v0  ;;  %s1892_s12 = smov 108   ;;  %s1893_s13 = smov 109  }
   0x2   :  { %45 = vst [vmem:[#allocation2 + $0x38] sm:$0xff] %v1888_v0  ;;  %v50_v3 = vld [vmem:[%s3059_s0 + $0x10] sm:$0xff]  ;;  %v1981_v4 = vld [vmem:[%s3059_s0 + $0x18] sm:$0xff]  ;;  %v1777_v5 = vld [vmem:[%s3059_s0 + $0x28] sm:$0xff]  ;;  %1802 = vrot.lane.b32.xlu1 %v1888_v0, %s1889_s29  ;;  %s1894_s14 = smov 110   ;;  %s1895_s15 = smov 126  }
   0x3   :  { %54 = vst.msk [vmem:[#allocation2 + $0x20] sm:$0xff] %vm53_vm0, %v50_v3  ;;  %v1989_v6 = vld [vmem:[%s3059_s0 + $0x20] sm:$0xff]  ;;  %1797 = vrot.lane.b32.xlu0 %v1888_v0, %s1890_s30  ;;  %61 = vst.msk [vmem:[#allocation2 + $0x38] sm:$0xff] %vm53_vm0, %v1777_v5  ;;  %s1891_s0 = smov 92   ;;  %s1896_s16 = smov 127   ;;  %vm232_vm3 = vcmask 752640  }
   0x4   :  { %s1897_s17 = smov 19   ;;  %vm205_vm4 = vcmask 883712   ;;  %vm178_vm5 = vcmask 891904   ;;  %vm153_vm6 = vcmask 900096   ;;  %vm126_vm7 = vcmask 1031168  }
   0x5   :  { %vm99_vm8 = vcmask 1039360   ;;  %vm464_vm9 = vcmask 154624   ;;  %vm609_vm10 = vcmask 588800  }
   0x6   :  { %272 = vrot.lane.b32.xlu1 %v1965_v1, %s1890_s30 }
   0x7   :  { %270 = vrot.lane.b32.xlu0 %v1970_v2, %s1890_s30 }
   0xa   :  { %245 = vrot.lane.b32.xlu1 %v1965_v1, %s1889_s29  ;;  %v2008_v7 = vld [vmem:[#allocation2 + $0x20] sm:$0xff]  ;;  %v2074_v8 = vld [vmem:[#allocation2 + $0x38] sm:$0xff] }
   0xb   :  { %243 = vrot.lane.b32.xlu0 %v1970_v2, %s1889_s29 }
   0xe   :  { %216 = vrot.lane.b32.xlu1 %v1970_v2, %s1891_s0 }
   0xf   :  { %1807 = vrot.lane.b32.xlu0 %v1888_v0, %s1891_s0 }
  0x12   :  { %274 = vrot.lane.b32.xlu1 %v2008_v7, %s1890_s30 }
  0x13   :  { %218 = vrot.lane.b32.xlu0 %v1965_v1, %s1891_s0 }
  0x16   :  { %1812 = vrot.lane.b32.xlu1 %v1888_v0, %s1892_s12 }
  0x17   :  { %276 = vrot.lane.b32.xlu0 %v1981_v4, %s1890_s30 }
  0x1a   :  { %191 = vrot.lane.b32.xlu1 %v1965_v1, %s1892_s12 }
  0x1b   :  { %189 = vrot.lane.b32.xlu0 %v1970_v2, %s1892_s12 }
  0x1e   :  { %249 = vrot.lane.b32.xlu1 %v1981_v4, %s1889_s29 }
  0x1f   :  { %247 = vrot.lane.b32.xlu0 %v2008_v7, %s1889_s29 }
  0x22   :  { %164 = vrot.lane.b32.xlu1 %v1970_v2, %s1893_s13 }
  0x23   :  { %1817 = vrot.lane.b32.xlu0 %v1888_v0, %s1893_s13 }
  0x26   :  { %220 = vrot.lane.b32.xlu1 %v2008_v7, %s1891_s0 }
  0x27   :  { %166 = vrot.lane.b32.xlu0 %v1965_v1, %s1893_s13 }
  0x2a   :  { %1822 = vrot.lane.b32.xlu1 %v1888_v0, %s1894_s14 }
  0x2b   :  { %222 = vrot.lane.b32.xlu0 %v1981_v4, %s1891_s0 }
  0x2e   :  { %141 = vrot.lane.b32.xlu1 %v1965_v1, %s1894_s14 }
  0x2f   :  { %139 = vrot.lane.b32.xlu0 %v1970_v2, %s1894_s14 }
  0x32   :  { %195 = vrot.lane.b32.xlu1 %v1981_v4, %s1892_s12 }
  0x33   :  { %193 = vrot.lane.b32.xlu0 %v2008_v7, %s1892_s12 }
  0x36   :  { %112 = vrot.lane.b32.xlu1 %v1970_v2, %s1895_s15 }
  0x37   :  { %1827 = vrot.lane.b32.xlu0 %v1888_v0, %s1895_s15 }
  0x3a   :  { %168 = vrot.lane.b32.xlu1 %v2008_v7, %s1893_s13 }
  0x3b   :  { %114 = vrot.lane.b32.xlu0 %v1965_v1, %s1895_s15 }
  0x3e   :  { %1832 = vrot.lane.b32.xlu1 %v1888_v0, %s1896_s16 }
  0x3f   :  { %170 = vrot.lane.b32.xlu0 %v1981_v4, %s1893_s13 }
  0x42   :  { %87 = vrot.lane.b32.xlu1 %v1965_v1, %s1896_s16 }
  0x43   :  { %85 = vrot.lane.b32.xlu0 %v1970_v2, %s1896_s16 }
  0x46   :  { %145 = vrot.lane.b32.xlu1 %v1981_v4, %s1894_s14 }
  0x47   :  { %143 = vrot.lane.b32.xlu0 %v2008_v7, %s1894_s14 }
  0x4a   :  { %118 = vrot.lane.b32.xlu1 %v1981_v4, %s1895_s15 }
  0x4b   :  { %116 = vrot.lane.b32.xlu0 %v2008_v7, %s1895_s15 }
  0x4e   :  { %91 = vrot.lane.b32.xlu1 %v1981_v4, %s1896_s16 }
  0x4f   :  { %89 = vrot.lane.b32.xlu0 %v2008_v7, %s1896_s16 }
  0x52   :  { %280 = vrot.lane.b32.xlu1 %v2074_v8, %s1890_s30 }
  0x53   :  { %278 = vrot.lane.b32.xlu0 %v1989_v6, %s1890_s30 }
  0x56   :  { %253 = vrot.lane.b32.xlu1 %v2074_v8, %s1889_s29 }
  0x57   :  { %251 = vrot.lane.b32.xlu0 %v1989_v6, %s1889_s29 }
  0x5a   :  { %226 = vrot.lane.b32.xlu1 %v2074_v8, %s1891_s0 }
  0x5b   :  { %224 = vrot.lane.b32.xlu0 %v1989_v6, %s1891_s0 }
  0x5e   :  { %197 = vrot.lane.b32.xlu1 %v1989_v6, %s1892_s12 }
  0x5f   :  { %284 = vrot.lane.b32.xlu0 %v1888_v0, %s1890_s30 }
  0x62   :  { %257 = vrot.lane.b32.xlu1 %v1888_v0, %s1889_s29 }
  0x63   :  { %199 = vrot.lane.b32.xlu0 %v2074_v8, %s1892_s12 }
  0x66   :  { %174 = vrot.lane.b32.xlu1 %v2074_v8, %s1893_s13 }
  0x67   :  { %172 = vrot.lane.b32.xlu0 %v1989_v6, %s1893_s13 }
  0x6a   :  { %147 = vrot.lane.b32.xlu1 %v1989_v6, %s1894_s14 }
  0x6b   :  { %230 = vrot.lane.b32.xlu0 %v1888_v0, %s1891_s0 }
  0x6e   :  { %203 = vrot.lane.b32.xlu1 %v1888_v0, %s1892_s12 }
  0x6f   :  { %149 = vrot.lane.b32.xlu0 %v2074_v8, %s1894_s14 }
  0x72   :  { %122 = vrot.lane.b32.xlu1 %v2074_v8, %s1895_s15 }
  0x73   :  { %120 = vrot.lane.b32.xlu0 %v1989_v6, %s1895_s15 }
  0x74   :  { %v2112_v9 = vpop.permute.xlu1 %1802 }
  0x75   :  { %v2114_v10 = vpop.permute.xlu0 %1797  ;;  %v1804_v14 = vunpack.i.l.bf16 %v2112_v9 }
  0x76   :  { %95 = vrot.lane.b32.xlu1 %v2074_v8, %s1896_s16  ;;  %v1799_v13 = vunpack.i.l.bf16 %v2114_v10 }
  0x77   :  { %93 = vrot.lane.b32.xlu0 %v1989_v6, %s1896_s16 }
  0x78   :  { %v273_v11 = vpop.permute.xlu1 %272  ;;  %v1836_v20 = vpack.i.bf16 %v1804_v14, %v1799_v13 }
  0x79   :  { %v271_v12 = vpop.permute.xlu0 %270 }
  0x7a   :  { %124 = vrot.lane.b32.xlu1 %v1888_v0, %s1895_s15  ;;  %v287_v17 = vsel %vm286_vm1, %v1799_v13, %v271_v12  ;;  %v288_v21 = vsel %vm286_vm1, %v271_v12, %v273_v11 }
  0x7b   :  { %151 = vrot.lane.b32.xlu0 %v1888_v0, %s1894_s14 }
  0x7c   :  { %v246_v15 = vpop.permute.xlu1 %245 }
  0x7d   :  { %v244_v16 = vpop.permute.xlu0 %243 }
  0x7e   :  { %448 = vrot.lane.b32.xlu1 %v287_v17, %s1897_s17  ;;  %v261_v25 = vsel %vm259_vm2, %v244_v16, %v246_v15  ;;  %v260_v26 = vsel %vm259_vm2, %v1804_v14, %v244_v16 }
  0x7f   :  { %97 = vrot.lane.b32.xlu0 %v1888_v0, %s1896_s16 }
  0x80   :  { %v217_v18 = vpop.permute.xlu1 %216 }
  0x81   :  { %v2130_v19 = vpop.permute.xlu0 %1807 }
  0x82   :  { %1837 = vrot.lane.b32.xlu1 %v1836_v20, %s1897_s17  ;;  %v1809_v24 = vunpack.i.l.bf16 %v2130_v19 }
  0x83   :  { %450 = vrot.lane.b32.xlu0 %v288_v21, %s1897_s17 }
  0x84   :  { %v275_v22 = vpop.permute.xlu1 %274  ;;  %v233_v30 = vsel %vm232_vm3, %v1809_v24, %v217_v18 }
  0x85   :  { %v219_v23 = vpop.permute.xlu0 %218  ;;  %v289_v35 = vsel %vm286_vm1, %v273_v11, %v275_v22 }
  0x86   :  { %432 = vrot.lane.b32.xlu1 %v261_v25, %s1897_s17  ;;  %v234_v29 = vsel %vm232_vm3, %v217_v18, %v219_v23 }
  0x87   :  { %430 = vrot.lane.b32.xlu0 %v260_v26, %s1897_s17 }
  0x88   :  { %v2140_v27 = vpop.permute.xlu1 %1812 }
  0x89   :  { %v2142_v28 = vpop.permute.xlu0 %276  ;;  %v1814_v31 = vunpack.i.l.bf16 %v2140_v27 }
  0x8a   :  { %414 = vrot.lane.b32.xlu1 %v234_v29, %s1897_s17  ;;  %v290_v34 = vsel %vm286_vm1, %v275_v22, %v2142_v28 }
  0x8b   :  { %412 = vrot.lane.b32.xlu0 %v233_v30, %s1897_s17  ;;  %v1841_v38 = vpack.i.bf16 %v1814_v31, %v1809_v24 }
  0x8c   :  { %v192_v32 = vpop.permute.xlu1 %191 }
  0x8d   :  { %v190_v33 = vpop.permute.xlu0 %189 }
  0x8e   :  { %454 = vrot.lane.b32.xlu1 %v290_v34, %s1897_s17  ;;  %v206_v39 = vsel %vm205_vm4, %v1814_v31, %v190_v33  ;;  %v207_v44 = vsel %vm205_vm4, %v190_v33, %v192_v32 }
  0x8f   :  { %452 = vrot.lane.b32.xlu0 %v289_v35, %s1897_s17 }
  0x90   :  { %v2154_v36 = vpop.permute.xlu1 %249 }
  0x91   :  { %v248_v37 = vpop.permute.xlu0 %247 }
  0x92   :  { %394 = vrot.lane.b32.xlu1 %v206_v39, %s1897_s17  ;;  %v262_v43 = vsel %vm259_vm2, %v246_v15, %v248_v37  ;;  %v263_v48 = vsel %vm259_vm2, %v248_v37, %v2154_v36 }
  0x93   :  { %1842 = vrot.lane.b32.xlu0 %v1841_v38, %s1897_s17 }
  0x94   :  { %v165_v40 = vpop.permute.xlu1 %164 }
  0x95   :  { %v2159_v41 = vpop.permute.xlu0 %1817 }
  0x96   :  { %v1819_v42 = vunpack.i.l.bf16 %v2159_v41  ;;  %434 = vrot.lane.b32.xlu1 %v262_v43, %s1897_s17 }
  0x97   :  { %396 = vrot.lane.b32.xlu0 %v207_v44, %s1897_s17 }
  0x98   :  { %v221_v45 = vpop.permute.xlu1 %220  ;;  %v179_v47 = vsel %vm178_vm5, %v1819_v42, %v165_v40 }
  0x99   :  { %v167_v46 = vpop.permute.xlu0 %166  ;;  %v235_v53 = vsel %vm232_vm3, %v219_v23, %v221_v45 }
  0x9a   :  { %376 = vrot.lane.b32.xlu1 %v179_v47, %s1897_s17  ;;  %v180_v54 = vsel %vm178_vm5, %v165_v40, %v167_v46 }
  0x9b   :  { %436 = vrot.lane.b32.xlu0 %v263_v48, %s1897_s17 }
  0x9c   :  { %v1823_v49 = vpop.permute.xlu1 %1822 }
  0x9d   :  { %v2171_v50 = vpop.permute.xlu0 %222  ;;  %v1825_v51 = vunpack.i.h.bf16 %v1823_v49  ;;  %v1824_v52 = vunpack.i.l.bf16 %v1823_v49 }
  0x9e   :  { %416 = vrot.lane.b32.xlu1 %v235_v53, %s1897_s17  ;;  %v236_v59 = vsel %vm232_vm3, %v221_v45, %v2171_v50 }
  0x9f   :  { %378 = vrot.lane.b32.xlu0 %v180_v54, %s1897_s17  ;;  %v154_v55 = vsel %vm153_vm6, %v1825_v51, %v1824_v52 }
  0xa0   :  { %v142_v56 = vpop.permute.xlu1 %141  ;;  %v1846_v58 = vpack.i.bf16 %v154_v55, %v1819_v42 }
  0xa1   :  { %v140_v57 = vpop.permute.xlu0 %139 }
  0xa2   :  { %1847 = vrot.lane.b32.xlu1 %v1846_v58, %s1897_s17  ;;  %v156_v62 = vsel %vm153_vm6, %v140_v57, %v142_v56  ;;  %v155_v63 = vsel %vm153_vm6, %v1824_v52, %v140_v57 }
  0xa3   :  { %418 = vrot.lane.b32.xlu0 %v236_v59, %s1897_s17 }
  0xa4   :  { %v2182_v60 = vpop.permute.xlu1 %195 }
  0xa5   :  { %v194_v61 = vpop.permute.xlu0 %193 }
  0xa6   :  { %360 = vrot.lane.b32.xlu1 %v156_v62, %s1897_s17  ;;  %v209_v12 = vsel %vm205_vm4, %v194_v61, %v2182_v60  ;;  %v208_v13 = vsel %vm205_vm4, %v192_v32, %v194_v61 }
  0xa7   :  { %358 = vrot.lane.b32.xlu0 %v155_v63, %s1897_s17 }
  0xa8   :  { %v113_v3 = vpop.permute.xlu1 %112 }
  0xa9   :  { %v1828_v5 = vpop.permute.xlu0 %1827 }
  0xaa   :  { %v1829_v11 = vunpack.i.l.bf16 %v1828_v5  ;;  %400 = vrot.lane.b32.xlu1 %v209_v12, %s1897_s17  ;;  %v1830_v18 = vunpack.i.h.bf16 %v1828_v5 }
  0xab   :  { %398 = vrot.lane.b32.xlu0 %v208_v13, %s1897_s17 }
  0xac   :  { %v169_v14 = vpop.permute.xlu1 %168  ;;  %v128_v17 = vsel %vm126_vm7, %v1829_v11, %v113_v3  ;;  %v127_v29 = vsel %vm126_vm7, %v1830_v18, %v1829_v11 }
  0xad   :  { %v115_v15 = vpop.permute.xlu0 %114  ;;  %v181_v25 = vsel %vm178_vm5, %v167_v46, %v169_v14 }
  0xae   :  { %v129_v16 = vsel %vm126_vm7, %v113_v3, %v115_v15 }
  0xaf   :  { %342 = vrot.lane.b32.xlu1 %v129_v16, %s1897_s17  ;;  %340 = vrot.lane.b32.xlu0 %v128_v17, %s1897_s17 }
  0xb0   :  { %v1833_v20 = vpop.permute.xlu1 %1832 }
  0xb1   :  { %v2197_v21 = vpop.permute.xlu0 %170  ;;  %v1835_v22 = vunpack.i.h.bf16 %v1833_v20  ;;  %v1834_v23 = vunpack.i.l.bf16 %v1833_v20  ;;  %v1815_v20 = vunpack.i.h.bf16 %v2140_v27 }
  0xb2   :  { %v182_v24 = vsel %vm178_vm5, %v169_v14, %v2197_v21 }
  0xb3   :  { %382 = vrot.lane.b32.xlu1 %v182_v24, %s1897_s17  ;;  %380 = vrot.lane.b32.xlu0 %v181_v25, %s1897_s17  ;;  %v100_v26 = vsel %vm99_vm8, %v1835_v22, %v1834_v23 }
  0xb4   :  { %v88_v30 = vpop.permute.xlu1 %87  ;;  %v1851_v32 = vpack.i.bf16 %v100_v26, %v127_v29 }
  0xb5   :  { %v86_v31 = vpop.permute.xlu0 %85 }
  0xb6   :  { %v101_v33 = vsel %vm99_vm8, %v1834_v23, %v86_v31  ;;  %v102_v38 = vsel %vm99_vm8, %v86_v31, %v88_v30 }
  0xb7   :  { %322 = vrot.lane.b32.xlu1 %v101_v33, %s1897_s17  ;;  %1852 = vrot.lane.b32.xlu0 %v1851_v32, %s1897_s17 }
  0xb8   :  { %v2209_v34 = vpop.permute.xlu1 %145 }
  0xb9   :  { %v144_v35 = vpop.permute.xlu0 %143 }
  0xba   :  { %v157_v37 = vsel %vm153_vm6, %v142_v56, %v144_v35  ;;  %v158_v42 = vsel %vm153_vm6, %v144_v35, %v2209_v34 }
  0xbb   :  { %362 = vrot.lane.b32.xlu1 %v157_v37, %s1897_s17  ;;  %324 = vrot.lane.b32.xlu0 %v102_v38, %s1897_s17 }
  0xbc   :  { %v2215_v39 = vpop.permute.xlu1 %118 }
  0xbd   :  { %v117_v40 = vpop.permute.xlu0 %116 }
  0xbe   :  { %v130_v45 = vsel %vm126_vm7, %v115_v15, %v117_v40  ;;  %v131_v49 = vsel %vm126_vm7, %v117_v40, %v2215_v39 }
  0xbf   :  { %1857 = vrot.lane.b32.xlu1 %v1888_v0, %s1897_s17  ;;  %364 = vrot.lane.b32.xlu0 %v158_v42, %s1897_s17 }
  0xc0   :  { %v2222_v43 = vpop.permute.xlu1 %91 }
  0xc1   :  { %v90_v44 = vpop.permute.xlu0 %89 }
  0xc2   :  { %v103_v48 = vsel %vm99_vm8, %v88_v30, %v90_v44  ;;  %v104_v54 = vsel %vm99_vm8, %v90_v44, %v2222_v43  ;;  %v1820_v44 = vunpack.i.h.bf16 %v2159_v41 }
  0xc3   :  { %344 = vrot.lane.b32.xlu1 %v130_v45, %s1897_s17  ;;  %306 = vrot.lane.b32.xlu0 %v1970_v2, %s1897_s17 }
  0xc4   :  { %v281_v46 = vpop.permute.xlu1 %280 }
  0xc5   :  { %v279_v47 = vpop.permute.xlu0 %278 }
  0xc6   :  { %v291_v53 = vsel %vm286_vm1, %v2142_v28, %v279_v47  ;;  %v292_v56 = vsel %vm286_vm1, %v279_v47, %v281_v46 }
  0xc7   :  { %326 = vrot.lane.b32.xlu1 %v103_v48, %s1897_s17  ;;  %346 = vrot.lane.b32.xlu0 %v131_v49, %s1897_s17 }
  0xc8   :  { %v254_v51 = vpop.permute.xlu1 %253 }
  0xc9   :  { %v252_v52 = vpop.permute.xlu0 %251 }
  0xca   :  { %v264_v28 = vsel %vm259_vm2, %v2154_v36, %v252_v52  ;;  %v265_v63 = vsel %vm259_vm2, %v252_v52, %v254_v51  ;;  %v1800_v36 = vunpack.i.h.bf16 %v2114_v10 }
  0xcb   :  { %456 = vrot.lane.b32.xlu1 %v291_v53, %s1897_s17  ;;  %328 = vrot.lane.b32.xlu0 %v104_v54, %s1897_s17 }
  0xcc   :  { %v227_v2 = vpop.permute.xlu1 %226 }
  0xcd   :  { %v225_v55 = vpop.permute.xlu0 %224 }
  0xce   :  { %v237_v62 = vsel %vm232_vm3, %v2171_v50, %v225_v55  ;;  %v238_v12 = vsel %vm232_vm3, %v225_v55, %v227_v2 }
  0xcf   :  { %308 = vrot.lane.b32.xlu1 %v1965_v1, %s1897_s17  ;;  %458 = vrot.lane.b32.xlu0 %v292_v56, %s1897_s17  ;;  %v1805_v1 = vunpack.i.h.bf16 %v2112_v9 }
  0xd0   :  { %v198_v57 = vpop.permute.xlu1 %197 }
  0xd1   :  { %v285_v58 = vpop.permute.xlu0 %284  ;;  %v210_v9 = vsel %vm205_vm4, %v2182_v60, %v198_v57  ;;  %v266_v17 = vsel %vm259_vm2, %v254_v51, %v1805_v1  ;;  %v1810_v60 = vunpack.i.h.bf16 %v2130_v19 }
  0xd2   :  { %v294_v50 = vsel %vm286_vm1, %v1800_v36, %v285_v58 }
  0xd3   :  { %438 = vrot.lane.b32.xlu1 %v264_v28, %s1897_s17  ;;  %310 = vrot.lane.b32.xlu0 %v2008_v7, %s1897_s17  ;;  %v293_v7 = vsel %vm286_vm1, %v281_v46, %v1800_v36  ;;  %v239_v32 = vsel %vm232_vm3, %v227_v2, %v1810_v60 }
  0xd4   :  { %v258_v59 = vpop.permute.xlu1 %257 }
  0xd5   :  { %v200_v61 = vpop.permute.xlu0 %199  ;;  %v267_v11 = vsel %vm259_vm2, %v1805_v1, %v258_v59 }
  0xd6   :  { %v1861_v13 = vpack.i.bf16 %v267_v11, %v294_v50  ;;  %v211_v18 = vsel %vm205_vm4, %v198_v57, %v200_v61  ;;  %v212_v42 = vsel %vm205_vm4, %v200_v61, %v1815_v20 }
  0xd7   :  { %420 = vrot.lane.b32.xlu1 %v237_v62, %s1897_s17  ;;  %440 = vrot.lane.b32.xlu0 %v265_v63, %s1897_s17 }
  0xd8   :  { %v175_v3 = vpop.permute.xlu1 %174 }
  0xd9   :  { %v173_v5 = vpop.permute.xlu0 %172  ;;  %v185_v48 = vsel %vm178_vm5, %v175_v3, %v1820_v44 }
  0xda   :  { %v184_v25 = vsel %vm178_vm5, %v173_v5, %v175_v3  ;;  %v183_v26 = vsel %vm178_vm5, %v2197_v21, %v173_v5 }
  0xdb   :  { %460 = vrot.lane.b32.xlu1 %v293_v7, %s1897_s17  ;;  %422 = vrot.lane.b32.xlu0 %v238_v12, %s1897_s17  ;;  %v1898_v12 = vmov 0  }
  0xdc   :  { %v148_v14 = vpop.permute.xlu1 %147  ;;  %1882 = vset.pattern.permute.xlu0 %v1898_v12  ;;  %1881 = vset.pattern.permute.xlu1 %v1898_v12 }
  0xdd   :  { %v231_v15 = vpop.permute.xlu0 %230  ;;  %v159_v35 = vsel %vm153_vm6, %v2209_v34, %v148_v14 }
  0xde   :  { %v240_v29 = vsel %vm232_vm3, %v1810_v60, %v231_v15 }
  0xdf   :  { %402 = vrot.lane.b32.xlu1 %v210_v9, %s1897_s17  ;;  %1862 = vrot.lane.b32.xlu0 %v1861_v13, %s1897_s17  ;;  %v296_v9 = vld [vmem:[%s3060_s4] sm:$0xff] }
  0xe0   :  { %v204_v10 = vpop.permute.xlu1 %203 }
  0xe1   :  { %v150_v16 = vpop.permute.xlu0 %149  ;;  %v213_v24 = vsel %vm205_vm4, %v1815_v20, %v204_v10 }
  0xe2   :  { %v1866_v30 = vpack.i.bf16 %v213_v24, %v240_v29  ;;  %v160_v21 = vsel %vm153_vm6, %v148_v14, %v150_v16 }
  0xe3   :  { %442 = vrot.lane.b32.xlu1 %v266_v17, %s1897_s17  ;;  %404 = vrot.lane.b32.xlu0 %v211_v18, %s1897_s17  ;;  %v1008_v18 = vld [vmem:[%s3061_s6] sm:$0xff] }
  0xe4   :  { %v2270_v22 = vpop.permute.xlu1 %122 }
  0xe5   :  { %v121_v23 = vpop.permute.xlu0 %120 }
  0xe6   :  { %v132_v40 = vsel %vm126_vm7, %v2215_v39, %v121_v23  ;;  %v133_v39 = vsel %vm126_vm7, %v121_v23, %v2270_v22 }
  0xe7   :  { %386 = vrot.lane.b32.xlu1 %v184_v25, %s1897_s17  ;;  %384 = vrot.lane.b32.xlu0 %v183_v26, %s1897_s17 }
  0xe8   :  { %v2280_v27 = vpop.permute.xlu1 %95 }
  0xe9   :  { %v94_v31 = vpop.permute.xlu0 %93 }
  0xea   :  { %v105_v2 = vsel %vm99_vm8, %v2222_v43, %v94_v31  ;;  %v106_v43 = vsel %vm99_vm8, %v94_v31, %v2280_v27 }
  0xeb   :  { %1867 = vrot.lane.b32.xlu1 %v1866_v30, %s1897_s17  ;;  %424 = vrot.lane.b32.xlu0 %v239_v32, %s1897_s17 }
  0xec   :  { %v125_v19 = vpop.permute.xlu1 %124 }
  0xed   :  { %v152_v33 = vpop.permute.xlu0 %151  ;;  %v134_v7 = vsel %vm126_vm7, %v2270_v22, %v125_v19 }
  0xee   :  { %v1871_v53 = vpack.i.bf16 %v152_v33, %v1820_v44  ;;  %v161_v58 = vsel %vm153_vm6, %v150_v16, %v152_v33 }
  0xef   :  { %368 = vrot.lane.b32.xlu1 %v160_v21, %s1897_s17  ;;  %366 = vrot.lane.b32.xlu0 %v159_v35, %s1897_s17 }
  0xf0   :  { %v449_v37 = vpop.permute.xlu1 %448 }
  0xf1   :  { %v2290_v38 = vpop.permute.xlu0 %97 }
  0xf2   :  { %v1876_v1 = vpack.i.bf16 %v2290_v38, %v125_v19  ;;  %v107_v14 = vsel %vm99_vm8, %v2280_v27, %v2290_v38 }
  0xf3   :  { %348 = vrot.lane.b32.xlu1 %v132_v40, %s1897_s17  ;;  %406 = vrot.lane.b32.xlu0 %v212_v42, %s1897_s17 }
  0xf4   :  { %v1838_v34 = vpop.permute.xlu1 %1837 }
  0xf5   :  { %v451_v45 = vpop.permute.xlu0 %450  ;;  %v1839_v46 = vunpack.i.l.bf16 %v1838_v34  ;;  %v1840_v49 = vunpack.i.h.bf16 %v1838_v34 }
  0xf6   :  { %v530_v47 = vsel %vm464_vm9, %v449_v37, %v451_v45 }
  0xf7   :  { %627 = vmatprep.subr.mxu0 %v530_v47  ;;  %388 = vrot.lane.b32.xlu1 %v185_v48, %s1897_s17  ;;  %v529_v51 = vsel %vm464_vm9, %v1839_v46, %v449_v37 }
  0xf8   :  { %350 = vrot.lane.b32.xlu0 %v133_v39, %s1897_s17  ;;  %v433_v52 = vpop.permute.xlu1 %432  ;;  %628 = vmatpush1.msra.mxu0 %v529_v51 }
  0xf9   :  { %v431_v41 = vpop.permute.xlu0 %430 }
  0xfa   :  { %v522_v54 = vsel %vm464_vm9, %v431_v41, %v433_v52  ;;  %v521_v55 = vsel %vm464_vm9, %v1840_v49, %v431_v41 }
  0xfb   :  { %629 = vmatprep.subr.mxu0 %v522_v54  ;;  %330 = vrot.lane.b32.xlu1 %v105_v2, %s1897_s17 }
  0xfc   :  { %1872 = vrot.lane.b32.xlu0 %v1871_v53, %s1897_s17  ;;  %630 = vmatpush1.msra.mxu0 %v521_v55  ;;  %v415_v56 = vpop.permute.xlu1 %414 }
  0xfd   :  { %v413_v57 = vpop.permute.xlu0 %412 }
  0xfe   :  { %v514_v28 = vsel %vm464_vm9, %v413_v57, %v415_v56 }
  0xff   :  { %370 = vrot.lane.b32.xlu1 %v161_v58, %s1897_s17  ;;  %631 = vmatprep.subr.mxu0 %v514_v28 }
 0x100   :  { %332 = vrot.lane.b32.xlu0 %v106_v43, %s1897_s17  ;;  %v2317_v59 = vpop.permute.xlu1 %454 }
 0x101   :  { %v453_v61 = vpop.permute.xlu0 %452 }
 0x102   :  { %v532_v62 = vsel %vm464_vm9, %v453_v61, %v2317_v59  ;;  %v531_v63 = vsel %vm464_vm9, %v451_v45, %v453_v61 }
 0x103   :  { %314 = vrot.lane.b32.xlu1 %v1989_v6, %s1897_s17  ;;  %698 = vmatprep.subr.mxu1 %v532_v62 }
 0x104   :  { %312 = vrot.lane.b32.xlu0 %v1981_v4, %s1897_s17  ;;  %699 = vmatpush1.msra.mxu1 %v531_v63  ;;  %v395_v36 = vpop.permute.xlu1 %394 }
 0x105   :  { %v1843_v3 = vpop.permute.xlu0 %1842 }
 0x106   :  { %v1844_v5 = vunpack.i.l.bf16 %v1843_v3  ;;  %v1845_v11 = vunpack.i.h.bf16 %v1843_v3 }
 0x107   :  { %1877 = vrot.lane.b32.xlu1 %v1876_v1, %s1897_s17 }
 0x108   :  { %352 = vrot.lane.b32.xlu0 %v134_v7, %s1897_s17  ;;  %v513_v6 = vsel %vm464_vm9, %v1844_v5, %v413_v57  ;;  %v435_v4 = vpop.permute.xlu1 %434  ;;  %v505_v15 = vsel %vm464_vm9, %v1845_v11, %v395_v36 }
 0x109   :  { %v397_v50 = vpop.permute.xlu0 %396  ;;  %632 = vmatpush1.msra.mxu0 %v513_v6  ;;  %v523_v17 = vsel %vm464_vm9, %v433_v52, %v435_v4 }
 0x10a   :  { %v506_v13 = vsel %vm464_vm9, %v395_v36, %v397_v50  ;;  %v2386_v36 = vld [vmem:[%s3062_s3] sm:$0xff] }
 0x10b   :  { %316 = vrot.lane.b32.xlu1 %v2074_v8, %s1897_s17  ;;  %633 = vmatprep.subr.mxu0 %v506_v13 }
 0x10c   :  { %334 = vrot.lane.b32.xlu0 %v107_v14, %s1897_s17  ;;  %634 = vmatpush1.msra.mxu0 %v505_v15  ;;  %v377_v10 = vpop.permute.xlu1 %376 }
 0x10d   :  { %v2343_v16 = vpop.permute.xlu0 %436 }
 0x10e   :  { %v524_v8 = vsel %vm464_vm9, %v435_v4, %v2343_v16 }
 0x10f   :  { %700 = vmatprep.subr.mxu1 %v524_v8  ;;  %299 = vperm.xlu1 %1881, %v296_v9  }
 0x110   :  { %318 = vrot.lane.b32.xlu0 %v1888_v0, %s1897_s17  ;;  %701 = vmatpush1.msra.mxu1 %v523_v17  ;;  %v417_v20 = vpop.permute.xlu1 %416 }
 0x111   :  { %v379_v22 = vpop.permute.xlu0 %378  ;;  %v515_v29 = vsel %vm464_vm9, %v415_v56, %v417_v20 }
 0x112   :  { %v498_v23 = vsel %vm464_vm9, %v377_v10, %v379_v22 }
 0x113   :  { %635 = vmatprep.subr.mxu0 %v498_v23  ;;  %1011 = vperm.xlu1 %1881, %v1008_v18  }
 0x114   :  { %v1848_v60 = vpop.permute.xlu1 %1847 }
 0x115   :  { %v2354_v24 = vpop.permute.xlu0 %418  ;;  %v1849_v25 = vunpack.i.l.bf16 %v1848_v60  ;;  %v1850_v30 = vunpack.i.h.bf16 %v1848_v60 }
 0x116   :  { %v516_v26 = vsel %vm464_vm9, %v417_v20, %v2354_v24 }
 0x117   :  { %702 = vmatprep.subr.mxu1 %v516_v26  ;;  %v497_v27 = vsel %vm464_vm9, %v1849_v25, %v377_v10 }
 0x118   :  { %703 = vmatpush1.msra.mxu1 %v515_v29  ;;  %v361_v31 = vpop.permute.xlu1 %360  ;;  %636 = vmatpush1.msra.mxu0 %v497_v27 }
 0x119   :  { %v359_v32 = vpop.permute.xlu0 %358 }
 0x11a   :  { %v490_v19 = vsel %vm464_vm9, %v359_v32, %v361_v31  ;;  %v489_v33 = vsel %vm464_vm9, %v1850_v30, %v359_v32 }
 0x11b   :  { %637 = vmatprep.subr.mxu0 %v490_v19 }
 0x11c   :  { %638 = vmatpush1.msra.mxu0 %v489_v33  ;;  %v2362_v21 = vpop.permute.xlu1 %400 }
 0x11d   :  { %v399_v35 = vpop.permute.xlu0 %398 }
 0x11e   :  { %v508_v37 = vsel %vm464_vm9, %v399_v35, %v2362_v21  ;;  %v507_v38 = vsel %vm464_vm9, %v397_v50, %v399_v35 }
 0x11f   :  { %704 = vmatprep.subr.mxu1 %v508_v37 }
 0x120   :  { %705 = vmatpush1.msra.mxu1 %v507_v38 }
 0x121   :  { %v343_v40 = vpop.permute.xlu1 %342  ;;  %v341_v42 = vpop.permute.xlu0 %340 }
 0x122   :  { %v482_v44 = vsel %vm464_vm9, %v341_v42, %v343_v40 }
 0x123   :  { %639 = vmatprep.subr.mxu0 %v482_v44 }
 0x125   :  { %v2368_v34 = vpop.permute.xlu1 %382  ;;  %v381_v45 = vpop.permute.xlu0 %380 }
 0x126   :  { %v500_v46 = vsel %vm464_vm9, %v381_v45, %v2368_v34  ;;  %v499_v47 = vsel %vm464_vm9, %v379_v22, %v381_v45 }
 0x127   :  { %706 = vmatprep.subr.mxu1 %v500_v46 }
 0x128   :  { %707 = vmatpush1.msra.mxu1 %v499_v47 }
 0x129   :  { %v323_v48 = vpop.permute.xlu1 %322  ;;  %v1853_v39 = vpop.permute.xlu0 %1852 }
 0x12a   :  { %v1854_v49 = vunpack.i.l.bf16 %v1853_v39  ;;  %v1855_v51 = vunpack.i.h.bf16 %v1853_v39 }
 0x12c   :  { %v481_v52 = vsel %vm464_vm9, %v1854_v49, %v341_v42  ;;  %v473_v2 = vsel %vm464_vm9, %v1855_v51, %v323_v48 }
 0x12d   :  { %v363_v41 = vpop.permute.xlu1 %362  ;;  %v325_v53 = vpop.permute.xlu0 %324  ;;  %640 = vmatpush1.msra.mxu0 %v481_v52 }
 0x12e   :  { %v474_v54 = vsel %vm464_vm9, %v323_v48, %v325_v53  ;;  %v491_v43 = vsel %vm464_vm9, %v361_v31, %v363_v41 }
 0x12f   :  { %641 = vmatprep.subr.mxu0 %v474_v54 }
 0x130   :  { %642 = vmatpush1.msra.mxu0 %v473_v2 }
 0x131   :  { %v1858_v55 = vpop.permute.xlu1 %1857  ;;  %v2376_v56 = vpop.permute.xlu0 %364 }
 0x132   :  { %v1860_v57 = vunpack.i.h.bf16 %v1858_v55  ;;  %v1859_v58 = vunpack.i.l.bf16 %v1858_v55  ;;  %v492_v28 = vsel %vm464_vm9, %v363_v41, %v2376_v56 }
 0x133   :  { %708 = vmatprep.subr.mxu1 %v492_v28 }
 0x134   :  { %709 = vmatpush1.msra.mxu1 %v491_v43  ;;  %v465_v63 = vsel %vm464_vm9, %v1860_v57, %v1859_v58 }
 0x135   :  { %v345_v61 = vpop.permute.xlu1 %344  ;;  %v307_v62 = vpop.permute.xlu0 %306 }
 0x136   :  { %v466_v1 = vsel %vm464_vm9, %v1859_v58, %v307_v62  ;;  %v483_v7 = vsel %vm464_vm9, %v343_v40, %v345_v61 }
 0x137   :  { %643 = vmatprep.subr.mxu0 %v466_v1 }
 0x138   :  { %644 = vmatpush1.msra.mxu0 %v465_v63 }
 0x139   :  { %v327_v3 = vpop.permute.xlu1 %326  ;;  %v2388_v5 = vpop.permute.xlu0 %346  ;;  %1778 = vmatmul.mubr.msk.f32.vlgmr.msra.gmra.mxu0 %vm609_vm10, %v2386_v36 }
 0x13a   :  { %v484_v11 = vsel %vm464_vm9, %v345_v61, %v2388_v5  ;;  %819 = vmatprep.mubr.f32.mxu0 %v1888_v0  ;;  %v475_v50 = vsel %vm464_vm9, %v325_v53, %v327_v3 }
 0x13b   :  { %710 = vmatprep.subr.mxu1 %v484_v11 }
 0x13c   :  { %711 = vmatpush1.msra.mxu1 %v483_v7 }
 0x13d   :  { %v457_v12 = vpop.permute.xlu1 %456  ;;  %v2396_v6 = vpop.permute.xlu0 %328 }
 0x13e   :  { %v476_v4 = vsel %vm464_vm9, %v327_v3, %v2396_v6  ;;  %v533_v9 = vsel %vm464_vm9, %v2317_v59, %v457_v12 }
 0x13f   :  { %712 = vmatprep.subr.mxu1 %v476_v4 }
 0x140   :  { %713 = vmatpush1.msra.mxu1 %v475_v50 }
 0x141   :  { %v309_v13 = vpop.permute.xlu1 %308  ;;  %v459_v14 = vpop.permute.xlu0 %458 }
 0x142   :  { %v534_v15 = vsel %vm464_vm9, %v457_v12, %v459_v14  ;;  %v467_v18 = vsel %vm464_vm9, %v307_v62, %v309_v13 }
 0x143   :  { %769 = vmatprep.subr.mxu0 %v534_v15 }
 0x144   :  { %770 = vmatpush1.msra.mxu0 %v533_v9 }
 0x145   :  { %v439_v10 = vpop.permute.xlu1 %438  ;;  %v2404_v8 = vpop.permute.xlu0 %310 }
 0x146   :  { %v468_v17 = vsel %vm464_vm9, %v309_v13, %v2404_v8  ;;  %v525_v59 = vsel %vm464_vm9, %v2343_v16, %v439_v10 }
 0x147   :  { %714 = vmatprep.subr.mxu1 %v468_v17 }
 0x148   :  { %715 = vmatpush1.msra.mxu1 %v467_v18 }
 0x149   :  { %v421_v20 = vpop.permute.xlu1 %420  ;;  %v441_v22 = vpop.permute.xlu0 %440  ;;  %1779 = vmatmul.mubr.msk.f32.vlgmr.msra.gmra.mxu1 %vm609_vm10, %v2386_v36 }
 0x14a   :  { %v526_v23 = vsel %vm464_vm9, %v439_v10, %v441_v22  ;;  %890 = vmatprep.mubr.f32.mxu1 %v1888_v0  ;;  %v517_v29 = vsel %vm464_vm9, %v2354_v24, %v421_v20 }
 0x14b   :  { %771 = vmatprep.subr.mxu0 %v526_v23 }
 0x14c   :  { %772 = vmatpush1.msra.mxu0 %v525_v59 }
 0x14d   :  { %v461_v60 = vpop.permute.xlu1 %460  ;;  %v423_v25 = vpop.permute.xlu0 %422 }
 0x14e   :  { %v518_v26 = vsel %vm464_vm9, %v421_v20, %v423_v25  ;;  %v535_v16 = vsel %vm464_vm9, %v459_v14, %v461_v60  ;;  %v2450_v20 = vld [vmem:[#allocation2 + $0x8] sm:$0xff] }
 0x14f   :  { %773 = vmatprep.subr.mxu0 %v518_v26 }
 0x150   :  { %774 = vmatpush1.msra.mxu0 %v517_v29 }
 0x151   :  { %v403_v30 = vpop.permute.xlu1 %402  ;;  %v1863_v27 = vpop.permute.xlu0 %1862 }
 0x152   :  { %v1864_v31 = vunpack.i.l.bf16 %v1863_v27  ;;  %v1865_v32 = vunpack.i.h.bf16 %v1863_v27  ;;  %v509_v24 = vsel %vm464_vm9, %v2362_v21, %v403_v30  ;;  %v899_v27 = vlaneseq }
 0x154   :  { %v536_v0 = vsel %vm464_vm9, %v461_v60, %v1864_v31  ;;  %v2462_v31 = vshrl.u32 %v899_v27, 7 }
 0x155   :  { %v443_v19 = vpop.permute.xlu1 %442  ;;  %v405_v33 = vpop.permute.xlu0 %404  ;;  %840 = vmatprep.subr.mxu1 %v536_v0 }
 0x156   :  { %841 = vmatpush1.msra.mxu1 %v535_v16  ;;  %v510_v35 = vsel %vm464_vm9, %v403_v30, %v405_v33  ;;  %v528_v37 = vsel %vm464_vm9, %v443_v19, %v1865_v32  ;;  %v527_v38 = vsel %vm464_vm9, %v441_v22, %v443_v19  ;;  %v901_v0 = vsub.s32 0, %v2462_v31 }
 0x157   :  { %775 = vmatprep.subr.mxu0 %v510_v35  ;;  %842 = vmatprep.subr.mxu1 %v528_v37  ;;  %v905_v19 = vsub.s32 1, %v2462_v31  ;;  %v897_v35 = vld [vmem:[%s3063_s1] sm:$0xff]  ;;  %v909_v37 = vsub.s32 2, %v2462_v31 }
 0x158   :  { %776 = vmatpush1.msra.mxu0 %v509_v24  ;;  %843 = vmatpush1.msra.mxu1 %v527_v38  ;;  %v2472_v24 = vrot.slane %v897_v35, %v901_v0 }
 0x159   :  { %v387_v40 = vpop.permute.xlu1 %386  ;;  %v385_v42 = vpop.permute.xlu0 %384 }
 0x15a   :  { %v502_v44 = vsel %vm464_vm9, %v385_v42, %v387_v40  ;;  %v501_v45 = vsel %vm464_vm9, %v2368_v34, %v385_v42 }
 0x15b   :  { %777 = vmatprep.subr.mxu0 %v502_v44  ;;  %v2480_v44 = vrot.slane %v897_v35, %v909_v37 }
 0x15c   :  { %778 = vmatpush1.msra.mxu0 %v501_v45 }
 0x15d   :  { %v1868_v46 = vpop.permute.xlu1 %1867  ;;  %v425_v47 = vpop.permute.xlu0 %424 }
 0x15e   :  { %v1869_v48 = vunpack.i.l.bf16 %v1868_v46  ;;  %v519_v21 = vsel %vm464_vm9, %v423_v25, %v425_v47  ;;  %v1870_v34 = vunpack.i.h.bf16 %v1868_v46 }
 0x160   :  { %v520_v39 = vsel %vm464_vm9, %v425_v47, %v1869_v48  ;;  %v913_v48 = vsub.s32 3, %v2462_v31 }
 0x161   :  { %v369_v49 = vpop.permute.xlu1 %368  ;;  %v367_v51 = vpop.permute.xlu0 %366  ;;  %844 = vmatprep.subr.mxu1 %v520_v39 }
 0x162   :  { %845 = vmatpush1.msra.mxu1 %v519_v21  ;;  %v494_v52 = vsel %vm464_vm9, %v367_v51, %v369_v49  ;;  %v493_v41 = vsel %vm464_vm9, %v2376_v56, %v367_v51 }
 0x163   :  { %779 = vmatprep.subr.mxu0 %v494_v52 }
 0x164   :  { %780 = vmatpush1.msra.mxu0 %v493_v41 }
 0x165   :  { %v349_v53 = vpop.permute.xlu1 %348  ;;  %v407_v54 = vpop.permute.xlu0 %406 }
 0x166   :  { %v512_v2 = vsel %vm464_vm9, %v407_v54, %v1870_v34  ;;  %v511_v55 = vsel %vm464_vm9, %v405_v33, %v407_v54  ;;  %v485_v43 = vsel %vm464_vm9, %v2388_v5, %v349_v53  ;;  %v2489_v34 = vrot.slane %v897_v35, %v913_v48 }
 0x167   :  { %846 = vmatprep.subr.mxu1 %v512_v2  ;;  %v921_v2 = vsub.s32 5, %v2462_v31 }
 0x168   :  { %847 = vmatpush1.msra.mxu1 %v511_v55 }
 0x169   :  { %v389_v57 = vpop.permute.xlu1 %388 }
 0x16a   :  { %v351_v58 = vpop.permute.xlu0 %350  ;;  %v503_v7 = vsel %vm464_vm9, %v387_v40, %v389_v57  ;;  %v2476_v40 = vrot.slane %v897_v35, %v905_v19 }
 0x16b   :  { %v486_v28 = vsel %vm464_vm9, %v349_v53, %v351_v58 }
 0x16c   :  { %781 = vmatprep.subr.mxu0 %v486_v28 }
 0x16d   :  { %782 = vmatpush1.msra.mxu0 %v485_v43  ;;  %v331_v56 = vpop.permute.xlu1 %330 }
 0x16e   :  { %v1873_v61 = vpop.permute.xlu0 %1872  ;;  %v477_v5 = vsel %vm464_vm9, %v2396_v6, %v331_v56 }
 0x16f   :  { %v1874_v62 = vunpack.i.l.bf16 %v1873_v61  ;;  %v1875_v63 = vunpack.i.h.bf16 %v1873_v61  ;;  %v925_v61 = vsub.s32 6, %v2462_v31 }
 0x171   :  { %v371_v1 = vpop.permute.xlu1 %370  ;;  %v504_v3 = vsel %vm464_vm9, %v389_v57, %v1874_v62 }
 0x172   :  { %v333_v11 = vpop.permute.xlu0 %332  ;;  %848 = vmatprep.subr.mxu1 %v504_v3  ;;  %v496_v12 = vsel %vm464_vm9, %v371_v1, %v1875_v63  ;;  %v495_v4 = vsel %vm464_vm9, %v369_v49, %v371_v1  ;;  %v917_v49 = vsub.s32 4, %v2462_v31  ;;  %v929_v63 = vsub.s32 7, %v2462_v31 }
 0x173   :  { %849 = vmatpush1.msra.mxu1 %v503_v7  ;;  %v478_v50 = vsel %vm464_vm9, %v331_v56, %v333_v11  ;;  %v2500_v56 = vrot.slane %v897_v35, %v921_v2 }
 0x174   :  { %783 = vmatprep.subr.mxu0 %v478_v50  ;;  %850 = vmatprep.subr.mxu1 %v496_v12  ;;  %v2493_v54 = vrot.slane %v897_v35, %v917_v49 }
 0x175   :  { %784 = vmatpush1.msra.mxu0 %v477_v5  ;;  %851 = vmatpush1.msra.mxu1 %v495_v4  ;;  %v315_v13 = vpop.permute.xlu1 %314  ;;  %v2507_v4 = vrot.slane %v897_v35, %v929_v63 }
 0x176   :  { %v313_v14 = vpop.permute.xlu0 %312 }
 0x177   :  { %v470_v15 = vsel %vm464_vm9, %v313_v14, %v315_v13  ;;  %v469_v9 = vsel %vm464_vm9, %v2404_v8, %v313_v14 }
 0x178   :  { %785 = vmatprep.subr.mxu0 %v470_v15 }
 0x179   :  { %786 = vmatpush1.msra.mxu0 %v469_v9  ;;  %v1878_v10 = vpop.permute.xlu1 %1877 }
 0x17a   :  { %v1879_v17 = vunpack.i.l.bf16 %v1878_v10  ;;  %v353_v18 = vpop.permute.xlu0 %352  ;;  %1780 = vmatmul.mubr.msk.f32.vlgmr.msra.gmra.mxu0 %vm609_vm10, %v2386_v36  ;;  %v1880_v22 = vunpack.i.h.bf16 %v1878_v10 }
 0x17b   :  { %1511 = vmatprep.mubr.f32.mxu0 %v2450_v20  ;;  %v487_v23 = vsel %vm464_vm9, %v351_v58, %v353_v18 }
 0x17c   :  { %v488_v6 = vsel %vm464_vm9, %v353_v18, %v1879_v17 }
 0x17d   :  { %852 = vmatprep.subr.mxu1 %v488_v6  ;;  %v317_v25 = vpop.permute.xlu1 %316 }
 0x17e   :  { %v335_v59 = vpop.permute.xlu0 %334  ;;  %853 = vmatpush1.msra.mxu1 %v487_v23  ;;  %v471_v30 = vsel %vm464_vm9, %v315_v13, %v317_v25 }
 0x17f   :  { %v480_v8 = vsel %vm464_vm9, %v335_v59, %v1880_v22  ;;  %v479_v60 = vsel %vm464_vm9, %v333_v11, %v335_v59  ;;  %v2505_v11 = vrot.slane %v897_v35, %v925_v61 }
 0x180   :  { %854 = vmatprep.subr.mxu1 %v480_v8 }
 0x181   :  { %855 = vmatpush1.msra.mxu1 %v479_v60 }
 0x182   :  { %v319_v26 = vpop.permute.xlu0 %318 }
 0x183   :  { %v472_v29 = vsel %vm464_vm9, %v317_v25, %v319_v26 }
 0x184   :  { %856 = vmatprep.subr.mxu1 %v472_v29 }
 0x185   :  { %857 = vmatpush1.msra.mxu1 %v471_v30 }
 0x186   :  { %1781 = vmatmul.mubr.msk.f32.vlgmr.msra.gmra.mxu1 %vm609_vm10, %v2386_v36 }
 0x187   :  { %1582 = vmatprep.mubr.f32.mxu1 %v2450_v20 }
 0x18a   :  { %v300_v33 = vpop.permute.xlu1 %299 }
 0x1f9   :  { %v679_v32 = vpop.f32.mrf.mxu0 }
 0x1fa   :  { %v680_v38 = vadd.f32 %v679_v32, %v300_v33 }
 0x1fb   :  { %v681_v16 = vpop.f32.mrf.mxu0 }
 0x1fc   :  { %v682_v36 = vadd.f32 %v681_v16, %v300_v33  ;;  %v939_v45 = vmul.f32 %v2472_v24, %v680_v38 }
 0x1fe   :  { %v940_v46 = vmul.f32 %v2476_v40, %v682_v36 }
 0x200   :  { %v947_v21 = vadd.f32 %v940_v46, %v939_v45 }
 0x209   :  { %v750_v42 = vpop.f32.mrf.mxu1 }
 0x20a   :  { %v751_v47 = vadd.f32 %v750_v42, %v300_v33 }
 0x20b   :  { %v752_v39 = vpop.f32.mrf.mxu1 }
 0x20c   :  { %v941_v52 = vmul.f32 %v2480_v44, %v751_v47  ;;  %v753_v41 = vadd.f32 %v752_v39, %v300_v33 }
 0x20e   :  { %v948_v57 = vadd.f32 %v947_v21, %v941_v52  ;;  %v942_v58 = vmul.f32 %v2489_v34, %v753_v41 }
 0x210   :  { %v949_v62 = vadd.f32 %v948_v57, %v942_v58 }
 0x23a   :  { %v821_v51 = vpop.f32.mrf.mxu0 }
 0x23b   :  { %v822_v53 = vadd.f32 %v821_v51, %v300_v33 }
 0x23c   :  { %v823_v55 = vpop.f32.mrf.mxu0 }
 0x23d   :  { %v943_v28 = vmul.f32 %v2493_v54, %v822_v53  ;;  %v824_v43 = vadd.f32 %v823_v55, %v300_v33 }
 0x23f   :  { %v950_v1 = vadd.f32 %v949_v62, %v943_v28  ;;  %v944_v3 = vmul.f32 %v2500_v56, %v824_v43 }
 0x241   :  { %v951_v5 = vadd.f32 %v950_v1, %v944_v3  ;;  %v993_v1 = vld [vmem:[%s3064_s5] sm:$0xff] }
 0x246   :  { %v892_v7 = vpop.f32.mrf.mxu1 }
 0x247   :  { %v893_v12 = vadd.f32 %v892_v7, %v300_v33 }
 0x248   :  { %v894_v50 = vpop.f32.mrf.mxu1 }
 0x249   :  { %v945_v13 = vmul.f32 %v2505_v11, %v893_v12  ;;  %v895_v14 = vadd.f32 %v894_v50, %v300_v33 }
 0x24b   :  { %v952_v15 = vadd.f32 %v951_v5, %v945_v13  ;;  %v946_v9 = vmul.f32 %v2507_v4, %v895_v14 }
 0x24d   :  { %v953_v10 = vadd.f32 %v952_v15, %v946_v9 }
 0x24f   :  { %954 = vadd.xlane.f32.xlu0 %v953_v10 }
 0x2d8   :  { %v955_v17 = vpop.xlane.xlu0 %954 }
 0x2d9   :  { %v956_v18 = vmul.f32 0.001953125, %v955_v17 }
 0x2db   :  { %v957_v6 = vsub.f32 %v680_v38, %v956_v18  ;;  %v958_v22 = vsub.f32 %v682_v36, %v956_v18  ;;  %v959_v23 = vsub.f32 %v751_v47, %v956_v18  ;;  %v960_v59 = vsub.f32 %v753_v41, %v956_v18 }
 0x2dc   :  { %v961_v8 = vsub.f32 %v822_v53, %v956_v18  ;;  %v962_v29 = vsub.f32 %v824_v43, %v956_v18  ;;  %v963_v33 = vsub.f32 %v893_v12, %v956_v18  ;;  %v964_v36 = vsub.f32 %v895_v14, %v956_v18  ;;  %v2527_v43 = vpop.permute.xlu1 %1011 }
 0x2dd   :  { %v965_v60 = vmul.f32 %v957_v6, %v2472_v24  ;;  %v966_v25 = vmul.f32 %v958_v22, %v2476_v40  ;;  %v967_v26 = vmul.f32 %v959_v23, %v2480_v44  ;;  %v968_v30 = vmul.f32 %v960_v59, %v2489_v34 }
 0x2de   :  { %v969_v16 = vmul.f32 %v961_v8, %v2493_v54  ;;  %v970_v42 = vmul.f32 %v962_v29, %v2500_v56  ;;  %v2518_v47 = vmul.f32 %v963_v33, %v2505_v11  ;;  %v2521_v21 = vmul.f32 %v964_v36, %v2507_v4 }
 0x2df   :  { %v973_v27 = vmul.f32 %v965_v60, %v965_v60  ;;  %v974_v32 = vmul.f32 %v966_v25, %v966_v25  ;;  %v975_v35 = vmul.f32 %v967_v26, %v967_v26  ;;  %v976_v45 = vmul.f32 %v968_v30, %v968_v30 }
 0x2e0   :  { %v977_v39 = vmul.f32 %v969_v16, %v969_v16  ;;  %v978_v52 = vmul.f32 %v970_v42, %v970_v42  ;;  %v979_v53 = vmul.f32 %v2518_v47, %v2518_v47  ;;  %v980_v57 = vmul.f32 %v2521_v21, %v2521_v21 }
 0x2e1   :  { %v981_v38 = vadd.f32 %v974_v32, %v973_v27 }
 0x2e3   :  { %v982_v46 = vadd.f32 %v981_v38, %v975_v35 }
 0x2e5   :  { %v983_v51 = vadd.f32 %v982_v46, %v976_v45 }
 0x2e7   :  { %v984_v41 = vadd.f32 %v983_v51, %v977_v39 }
 0x2e9   :  { %v985_v55 = vadd.f32 %v984_v41, %v978_v52 }
 0x2eb   :  { %v986_v58 = vadd.f32 %v985_v55, %v979_v53 }
 0x2ed   :  { %v987_v28 = vadd.f32 %v986_v58, %v980_v57 }
 0x2ef   :  { %988 = vadd.xlane.f32.xlu1 %v987_v28 }
 0x378   :  { %v989_v61 = vpop.xlane.xlu1 %988 }
 0x379   :  { %v990_v62 = vmul.f32 0.001953125, %v989_v61 }
 0x37b   :  { %v991_v63 = vadd.f32 1e-05, %v990_v62 }
 0x37d   :  { %1883 = vrsqrt.f32 %v991_v63 }
 0x38a   :  { %v1884_v3 = vpop.eup %1883 }
 0x38b   :  { %v994_v7 = vmul.f32 %v1884_v3, %v993_v1 }
 0x38d   :  { %997 = vperm.xlu0 %1882, %v994_v7  }
 0x408   :  { %v998_v12 = vpop.permute.xlu0 %997 }
 0x409   :  { %v1001_v50 = vmul.f32 %v998_v12, %v966_v25  ;;  %v1002_v5 = vmul.f32 %v998_v12, %v967_v26  ;;  %v1003_v13 = vmul.f32 %v998_v12, %v968_v30  ;;  %v1004_v8 = vmul.f32 %v998_v12, %v969_v16 }
 0x40a   :  { %v1007_v27 = vmul.f32 %v998_v12, %v2521_v21 }
 0x40b   :  { %v1015_v14 = vadd.f32 %v2527_v43, %v1001_v50  ;;  %v1016_v15 = vadd.f32 %v2527_v43, %v1002_v5  ;;  %v1017_v9 = vadd.f32 %v2527_v43, %v1003_v13 }
 0x40c   :  { %v1021_v33 = vadd.f32 %v2527_v43, %v1007_v27 }
 0x40d   :  { %v1023_v10 = vmax.f32 %v1015_v14, 0.0  ;;  %v1024_v17 = vmax.f32 %v1016_v15, 0.0  ;;  %v1025_v18 = vmax.f32 %v1017_v9, 0.0 }
 0x40f   :  { %v2536_v6 = vmul.f32 %v1023_v10, %v2476_v40  ;;  %v2543_v22 = vmul.f32 %v1024_v17, %v2480_v44  ;;  %v2546_v23 = vmul.f32 %v1025_v18, %v2489_v34  ;;  %v1000_v40 = vmul.f32 %v998_v12, %v965_v60 }
 0x410   :  { %v1018_v60 = vadd.f32 %v2527_v43, %v1004_v8 }
 0x411   :  { %1143 = vrot.lane.b32.xlu0 %v2536_v6, %s1891_s0  ;;  %1183 = vrot.lane.b32.xlu1 %v2536_v6, %s1890_s30  ;;  %v1014_v44 = vadd.f32 %v2527_v43, %v1000_v40 }
 0x412   :  { %v1026_v25 = vmax.f32 %v1018_v60, 0.0 }
 0x413   :  { %v1022_v34 = vmax.f32 %v1014_v44, 0.0 }
 0x414   :  { %v1034_v29 = vmul.f32 %v1026_v25, %v2493_v54  ;;  %v1029_v54 = vmax.f32 %v1021_v33, 0.0 }
 0x415   :  { %1147 = vrot.lane.b32.xlu0 %v2546_v23, %s1891_s0  ;;  %1185 = vrot.lane.b32.xlu1 %v2543_v22, %s1890_s30  ;;  %v2570_v59 = vmul.f32 %v1022_v34, %v2472_v24  ;;  %v1005_v24 = vmul.f32 %v998_v12, %v970_v42 }
 0x416   :  { %v1037_v16 = vmul.f32 %v1029_v54, %v2507_v4 }
 0x417   :  { %v1019_v26 = vadd.f32 %v2527_v43, %v1005_v24 }
 0x419   :  { %1125 = vrot.lane.b32.xlu0 %v2543_v22, %s1892_s12  ;;  %1187 = vrot.lane.b32.xlu1 %v2546_v23, %s1890_s30  ;;  %v1027_v30 = vmax.f32 %v1019_v26, 0.0 }
 0x41b   :  { %v2600_v32 = vmul.f32 %v1027_v30, %v2500_v56  ;;  %v1006_v56 = vmul.f32 %v998_v12, %v2518_v47 }
 0x41d   :  { %1105 = vrot.lane.b32.xlu0 %v2536_v6, %s1893_s13  ;;  %1163 = vrot.lane.b32.xlu1 %v2536_v6, %s1889_s29  ;;  %v1020_v4 = vadd.f32 %v2527_v43, %v1006_v56 }
 0x41f   :  { %v1028_v35 = vmax.f32 %v1020_v4, 0.0 }
 0x421   :  { %1109 = vrot.lane.b32.xlu0 %v2546_v23, %s1893_s13  ;;  %1165 = vrot.lane.b32.xlu1 %v2543_v22, %s1889_s29  ;;  %v2630_v38 = vmul.f32 %v1028_v35, %v2505_v11 }
 0x425   :  { %1089 = vrot.lane.b32.xlu0 %v2543_v22, %s1894_s14  ;;  %1167 = vrot.lane.b32.xlu1 %v2546_v23, %s1889_s29 }
 0x429   :  { %1145 = vrot.lane.b32.xlu1 %v2543_v22, %s1891_s0  ;;  %1085 = vrot.lane.b32.xlu0 %v2570_v59, %s1894_s14 }
 0x42d   :  { %1123 = vrot.lane.b32.xlu1 %v2536_v6, %s1892_s12  ;;  %1069 = vrot.lane.b32.xlu0 %v2543_v22, %s1895_s15 }
 0x431   :  { %1127 = vrot.lane.b32.xlu1 %v2546_v23, %s1892_s12  ;;  %1065 = vrot.lane.b32.xlu0 %v2570_v59, %s1895_s15 }
 0x435   :  { %1107 = vrot.lane.b32.xlu1 %v2543_v22, %s1893_s13  ;;  %1049 = vrot.lane.b32.xlu0 %v2543_v22, %s1896_s16 }
 0x439   :  { %1087 = vrot.lane.b32.xlu1 %v2536_v6, %s1894_s14  ;;  %1189 = vrot.lane.b32.xlu0 %v1034_v29, %s1890_s30 }
 0x43d   :  { %1091 = vrot.lane.b32.xlu1 %v2546_v23, %s1894_s14  ;;  %1045 = vrot.lane.b32.xlu0 %v2570_v59, %s1896_s16 }
 0x441   :  { %1067 = vrot.lane.b32.xlu1 %v2536_v6, %s1895_s15  ;;  %1171 = vrot.lane.b32.xlu0 %v2600_v32, %s1889_s29 }
 0x445   :  { %1071 = vrot.lane.b32.xlu1 %v2546_v23, %s1895_s15  ;;  %1151 = vrot.lane.b32.xlu0 %v2600_v32, %s1891_s0 }
 0x449   :  { %1047 = vrot.lane.b32.xlu1 %v2536_v6, %s1896_s16  ;;  %1195 = vrot.lane.b32.xlu0 %v1037_v16, %s1890_s30 }
 0x44d   :  { %1051 = vrot.lane.b32.xlu1 %v2546_v23, %s1896_s16  ;;  %1131 = vrot.lane.b32.xlu0 %v2600_v32, %s1892_s12 }
 0x451   :  { %1191 = vrot.lane.b32.xlu1 %v2600_v32, %s1890_s30  ;;  %1175 = vrot.lane.b32.xlu0 %v1037_v16, %s1889_s29 }
 0x455   :  { %1169 = vrot.lane.b32.xlu1 %v1034_v29, %s1889_s29  ;;  %1113 = vrot.lane.b32.xlu0 %v2600_v32, %s1893_s13 }
 0x459   :  { %1149 = vrot.lane.b32.xlu1 %v1034_v29, %s1891_s0  ;;  %1155 = vrot.lane.b32.xlu0 %v1037_v16, %s1891_s0 }
 0x45d   :  { %1193 = vrot.lane.b32.xlu1 %v2630_v38, %s1890_s30  ;;  %1095 = vrot.lane.b32.xlu0 %v2600_v32, %s1894_s14 }
 0x461   :  { %1129 = vrot.lane.b32.xlu1 %v1034_v29, %s1892_s12  ;;  %1135 = vrot.lane.b32.xlu0 %v1037_v16, %s1892_s12 }
 0x465   :  { %1173 = vrot.lane.b32.xlu1 %v2630_v38, %s1889_s29  ;;  %1075 = vrot.lane.b32.xlu0 %v2600_v32, %s1895_s15 }
 0x469   :  { %1111 = vrot.lane.b32.xlu1 %v1034_v29, %s1893_s13  ;;  %1053 = vrot.lane.b32.xlu0 %v1034_v29, %s1896_s16 }
 0x46d   :  { %1153 = vrot.lane.b32.xlu1 %v2630_v38, %s1891_s0  ;;  %1097 = vrot.lane.b32.xlu0 %v2630_v38, %s1894_s14 }
 0x471   :  { %1093 = vrot.lane.b32.xlu1 %v1034_v29, %s1894_s14  ;;  %1057 = vrot.lane.b32.xlu0 %v2630_v38, %s1896_s16 }
 0x475   :  { %1133 = vrot.lane.b32.xlu1 %v2630_v38, %s1892_s12  ;;  %1214 = vrot.lane.b32.xlu0 %v2543_v22, %s1897_s17 }
 0x479   :  { %1073 = vrot.lane.b32.xlu1 %v1034_v29, %s1895_s15  ;;  %1216 = vrot.lane.b32.xlu0 %v2546_v23, %s1897_s17 }
 0x47d   :  { %1115 = vrot.lane.b32.xlu1 %v2630_v38, %s1893_s13 }
 0x481   :  { %1055 = vrot.lane.b32.xlu1 %v2600_v32, %s1896_s16 }
 0x483   :  { %v2662_v11 = vpop.permute.xlu0 %1143  ;;  %v2664_v36 = vpop.permute.xlu1 %1183 }
 0x485   :  { %1077 = vrot.lane.b32.xlu1 %v2630_v38, %s1895_s15 }
 0x487   :  { %v2668_v42 = vpop.permute.xlu0 %1147  ;;  %v2670_v45 = vpop.permute.xlu1 %1185 }
 0x489   :  { %1212 = vrot.lane.b32.xlu1 %v2536_v6, %s1897_s17 }
 0x48b   :  { %v2674_v46 = vpop.permute.xlu0 %1125  ;;  %v1188_v47 = vpop.permute.xlu1 %1187 }
 0x48c   :  { %v1198_v62 = vsel %vm286_vm1, %v2670_v45, %v1188_v47 }
 0x48d   :  { %1210 = vrot.lane.b32.xlu1 %v2570_v59, %s1897_s17 }
 0x48f   :  { %v2678_v39 = vpop.permute.xlu0 %1105  ;;  %v1164_v51 = vpop.permute.xlu1 %1163 }
 0x490   :  { %1308 = vrot.lane.b32.xlu0 %v1164_v51, %s1897_s17 }
 0x491   :  { %1218 = vrot.lane.b32.xlu1 %v1034_v29, %s1897_s17 }
 0x493   :  { %v2682_v21 = vpop.permute.xlu0 %1109  ;;  %v2684_v52 = vpop.permute.xlu1 %1165 }
 0x494   :  { %v1177_v3 = vsel %vm259_vm2, %v1164_v51, %v2684_v52 }
 0x495   :  { %1322 = vrot.lane.b32.xlu1 %v2664_v36, %s1897_s17 }
 0x497   :  { %v2688_v41 = vpop.permute.xlu0 %1089  ;;  %v2690_v53 = vpop.permute.xlu1 %1167 }
 0x499   :  { %1294 = vrot.lane.b32.xlu1 %v2662_v11, %s1897_s17 }
 0x49b   :  { %v2694_v55 = vpop.permute.xlu1 %1145  ;;  %v1086_v57 = vpop.permute.xlu0 %1085 }
 0x49c   :  { %v1158_v50 = vsel %vm232_vm3, %v2694_v55, %v2668_v42 }
 0x49d   :  { %1266 = vrot.lane.b32.xlu1 %v2678_v39, %s1897_s17 }
 0x49f   :  { %v1124_v58 = vpop.permute.xlu1 %1123  ;;  %v2698_v28 = vpop.permute.xlu0 %1069 }
 0x4a0   :  { %1280 = vrot.lane.b32.xlu0 %v1124_v58, %s1897_s17  ;;  %v1137_v14 = vsel %vm205_vm4, %v1124_v58, %v2674_v46 }
 0x4a3   :  { %v2701_v43 = vpop.permute.xlu1 %1127  ;;  %v2703_v61 = vpop.permute.xlu0 %1065 }
 0x4a4   :  { %1326 = vrot.lane.b32.xlu0 %v1198_v62, %s1897_s17 }
 0x4a7   :  { %v2708_v63 = vpop.permute.xlu1 %1107  ;;  %v2710_v1 = vpop.permute.xlu0 %1049 }
 0x4a8   :  { %1310 = vrot.lane.b32.xlu0 %v1177_v3, %s1897_s17  ;;  %v1118_v10 = vsel %vm178_vm5, %v2708_v63, %v2682_v21 }
 0x4ab   :  { %v1088_v7 = vpop.permute.xlu1 %1087  ;;  %v1190_v12 = vpop.permute.xlu0 %1189 }
 0x4ac   :  { %1298 = vrot.lane.b32.xlu0 %v1158_v50, %s1897_s17  ;;  %v1100_v6 = vsel %vm153_vm6, %v1088_v7, %v2688_v41  ;;  %v1099_v40 = vsel %vm153_vm6, %v1086_v57, %v1088_v7  ;;  %v1199_v26 = vsel %vm286_vm1, %v1188_v47, %v1190_v12 }
 0x4af   :  { %v2719_v5 = vpop.permute.xlu1 %1091  ;;  %v1046_v13 = vpop.permute.xlu0 %1045 }
 0x4b0   :  { %1282 = vrot.lane.b32.xlu0 %v1137_v14, %s1897_s17 }
 0x4b3   :  { %v2724_v15 = vpop.permute.xlu1 %1067  ;;  %v1172_v9 = vpop.permute.xlu0 %1171 }
 0x4b4   :  { %1270 = vrot.lane.b32.xlu0 %v1118_v10, %s1897_s17 }
 0x4b7   :  { %v2730_v17 = vpop.permute.xlu1 %1071  ;;  %v1152_v18 = vpop.permute.xlu0 %1151 }
 0x4b8   :  { %1254 = vrot.lane.b32.xlu0 %v1100_v6, %s1897_s17  ;;  %v1081_v59 = vsel %vm126_vm7, %v2698_v28, %v2730_v17 }
 0x4bb   :  { %v1048_v22 = vpop.permute.xlu1 %1047  ;;  %v1196_v23 = vpop.permute.xlu0 %1195 }
 0x4bc   :  { %1252 = vrot.lane.b32.xlu0 %v1099_v40, %s1897_s17  ;;  %v1060_v24 = vsel %vm99_vm8, %v1048_v22, %v2710_v1  ;;  %v1059_v54 = vsel %vm99_vm8, %v1046_v13, %v1048_v22 }
 0x4bf   :  { %v2737_v44 = vpop.permute.xlu1 %1051  ;;  %v1132_v34 = vpop.permute.xlu0 %1131 }
 0x4c0   :  { %1242 = vrot.lane.b32.xlu0 %v1081_v59, %s1897_s17 }
 0x4c3   :  { %v1192_v8 = vpop.permute.xlu1 %1191  ;;  %v1176_v60 = vpop.permute.xlu0 %1175 }
 0x4c4   :  { %v2746_v25 = vsel %vm286_vm1, %v1190_v12, %v1192_v8  ;;  %1226 = vrot.lane.b32.xlu0 %v1060_v24, %s1897_s17 }
 0x4c7   :  { %v2750_v29 = vpop.permute.xlu1 %1169  ;;  %v1114_v30 = vpop.permute.xlu0 %1113 }
 0x4c8   :  { %1328 = vrot.lane.b32.xlu0 %v1199_v26, %s1897_s17  ;;  %v1180_v56 = vsel %vm259_vm2, %v2750_v29, %v1172_v9 }
 0x4cb   :  { %v1150_v27 = vpop.permute.xlu1 %1149  ;;  %v1156_v33 = vpop.permute.xlu0 %1155 }
 0x4cc   :  { %v2755_v16 = vsel %vm232_vm3, %v1150_v27, %v1152_v18  ;;  %1224 = vrot.lane.b32.xlu0 %v1059_v54, %s1897_s17  ;;  %v1159_v51 = vsel %vm232_vm3, %v2668_v42, %v1150_v27 }
 0x4cf   :  { %v1194_v4 = vpop.permute.xlu1 %1193  ;;  %v1096_v35 = vpop.permute.xlu0 %1095 }
 0x4d0   :  { %v2761_v47 = vsel %vm286_vm1, %v1194_v4, %v1196_v23  ;;  %1316 = vrot.lane.b32.xlu0 %v1180_v56, %s1897_s17  ;;  %v1201_v3 = vsel %vm286_vm1, %v1192_v8, %v1194_v4 }
 0x4d3   :  { %v1130_v57 = vpop.permute.xlu1 %1129  ;;  %v1136_v58 = vpop.permute.xlu0 %1135 }
 0x4d4   :  { %v2767_v62 = vsel %vm205_vm4, %v1130_v57, %v1132_v34  ;;  %1300 = vrot.lane.b32.xlu0 %v1159_v51, %s1897_s17  ;;  %v1139_v13 = vsel %vm205_vm4, %v2701_v43, %v1130_v57 }
 0x4d7   :  { %v1174_v7 = vpop.permute.xlu1 %1173  ;;  %v1076_v12 = vpop.permute.xlu0 %1075 }
 0x4d8   :  { %v2772_v50 = vsel %vm259_vm2, %v1174_v7, %v1176_v60  ;;  %1332 = vrot.lane.b32.xlu0 %v1201_v3, %s1897_s17  ;;  %v1181_v6 = vsel %vm259_vm2, %v1172_v9, %v1174_v7 }
 0x4db   :  { %v1112_v42 = vpop.permute.xlu1 %1111  ;;  %v1054_v14 = vpop.permute.xlu0 %1053 }
 0x4dc   :  { %v2778_v10 = vsel %vm178_vm5, %v1112_v42, %v1114_v30  ;;  %1286 = vrot.lane.b32.xlu0 %v1139_v13, %s1897_s17  ;;  %v1119_v59 = vsel %vm178_vm5, %v2682_v21, %v1112_v42 }
 0x4df   :  { %v1154_v22 = vpop.permute.xlu1 %1153  ;;  %v1098_v23 = vpop.permute.xlu0 %1097 }
 0x4e0   :  { %v2783_v40 = vsel %vm232_vm3, %v1154_v22, %v1156_v33  ;;  %1318 = vrot.lane.b32.xlu0 %v1181_v6, %s1897_s17  ;;  %v1161_v9 = vsel %vm232_vm3, %v1152_v18, %v1154_v22 }
 0x4e3   :  { %v1094_v8 = vpop.permute.xlu1 %1093  ;;  %v2788_v60 = vpop.permute.xlu0 %1057 }
 0x4e4   :  { %v2791_v24 = vsel %vm153_vm6, %v1094_v8, %v1096_v35  ;;  %1272 = vrot.lane.b32.xlu0 %v1119_v59, %s1897_s17  ;;  %v1102_v21 = vsel %vm153_vm6, %v2719_v5, %v1094_v8  ;;  %v1178_v8 = vsel %vm259_vm2, %v2684_v52, %v2690_v53 }
 0x4e7   :  { %v1134_v26 = vpop.permute.xlu1 %1133  ;;  %v1215_v27 = vpop.permute.xlu0 %1214 }
 0x4e8   :  { %v2796_v33 = vsel %vm205_vm4, %v1134_v26, %v1136_v58  ;;  %1304 = vrot.lane.b32.xlu0 %v1161_v9, %s1897_s17  ;;  %v1141_v18 = vsel %vm205_vm4, %v1132_v34, %v1134_v26  ;;  %v1062_v34 = vsel %vm99_vm8, %v2737_v44, %v1054_v14 }
 0x4eb   :  { %v1074_v54 = vpop.permute.xlu1 %1073  ;;  %v2801_v56 = vpop.permute.xlu0 %1216 }
 0x4ec   :  { %v2804_v4 = vsel %vm126_vm7, %v1074_v54, %v1076_v12  ;;  %v2808_v51 = vsel %vm464_vm9, %v1215_v27, %v2801_v56  ;;  %1258 = vrot.lane.b32.xlu0 %v1102_v21, %s1897_s17  ;;  %v1082_v58 = vsel %vm126_vm7, %v2730_v17, %v1074_v54  ;;  %v1197_v17 = vsel %vm286_vm1, %v2664_v36, %v2670_v45 }
 0x4ed   :  { %v1157_v45 = vsel %vm232_vm3, %v2662_v11, %v2694_v55  ;;  %v1204_v11 = vld [vmem:[%s3065_s8] sm:$0xff]  ;;  %v1061_v55 = vsel %vm99_vm8, %v2710_v1, %v2737_v44 }
 0x4ef   :  { %v1116_v57 = vpop.permute.xlu1 %1115 }
 0x4f0   :  { %1278 = vrot.lane.b32.xlu1 %v1116_v57, %s1897_s17  ;;  %1290 = vrot.lane.b32.xlu0 %v1141_v18, %s1897_s17  ;;  %v1121_v13 = vsel %vm178_vm5, %v1114_v30, %v1116_v57  ;;  %v1104_v30 = vsel %vm153_vm6, %v1096_v35, %v1098_v23  ;;  %v1138_v35 = vsel %vm205_vm4, %v2674_v46, %v2701_v43 }
 0x4f1   :  { %v1101_v46 = vsel %vm153_vm6, %v2688_v41, %v2719_v5 }
 0x4f3   :  { %v1056_v3 = vpop.permute.xlu1 %1055 }
 0x4f4   :  { %v1063_v7 = vsel %vm99_vm8, %v1054_v14, %v1056_v3  ;;  %1244 = vrot.lane.b32.xlu0 %v1082_v58, %s1897_s17  ;;  %1264 = vrot.lane.b32.xlu1 %v1098_v23, %s1897_s17  ;;  %v1064_v52 = vsel %vm99_vm8, %v1056_v3, %v2788_v60 }
 0x4f7   :  { %v1078_v42 = vpop.permute.xlu1 %1077 }
 0x4f8   :  { %1276 = vrot.lane.b32.xlu0 %v1121_v13, %s1897_s17  ;;  %1250 = vrot.lane.b32.xlu1 %v1078_v42, %s1897_s17  ;;  %v1084_v36 = vsel %vm126_vm7, %v1076_v12, %v1078_v42  ;;  %v1117_v12 = vsel %vm178_vm5, %v2678_v39, %v2708_v63  ;;  %v1080_v39 = vsel %vm126_vm7, %v2724_v15, %v2698_v28 }
 0x4f9   :  { %v1179_v28 = vsel %vm259_vm2, %v2690_v53, %v2750_v29 }
 0x4fb   :  { %v1213_v6 = vpop.permute.xlu1 %1212 }
 0x4fc   :  { %1230 = vrot.lane.b32.xlu0 %v1062_v34, %s1897_s17  ;;  %1324 = vrot.lane.b32.xlu1 %v1197_v17, %s1897_s17  ;;  %v2830_v22 = vsel %vm464_vm9, %v1213_v6, %v1215_v27 }
 0x4ff   :  { %v1211_v59 = vpop.permute.xlu1 %1210 }
 0x500   :  { %v2837_v14 = vsel %vm464_vm9, %v1211_v59, %v1213_v6  ;;  %1262 = vrot.lane.b32.xlu0 %v1104_v30, %s1897_s17  ;;  %1312 = vrot.lane.b32.xlu1 %v1178_v8, %s1897_s17 }
 0x502   :  { %v1309_v41 = vpop.permute.xlu0 %1308 }
 0x503   :  { %v2909_v44 = vpop.permute.xlu1 %1218 }
 0x504   :  { %1248 = vrot.lane.b32.xlu0 %v1084_v36, %s1897_s17  ;;  %1296 = vrot.lane.b32.xlu1 %v1157_v45, %s1897_s17 }
 0x507   :  { %v1323_v29 = vpop.permute.xlu1 %1322 }
 0x508   :  { %1284 = vrot.lane.b32.xlu1 %v1138_v35, %s1897_s17  ;;  %1234 = vrot.lane.b32.xlu0 %v1064_v52, %s1897_s17 }
 0x50c   :  { %1268 = vrot.lane.b32.xlu1 %v1117_v12, %s1897_s17  ;;  %1220 = vrot.lane.b32.xlu0 %v2600_v32, %s1897_s17  ;;  %v1079_v32 = vsel %vm126_vm7, %v2703_v61, %v2724_v15 }
 0x510   :  { %1256 = vrot.lane.b32.xlu1 %v1101_v46, %s1897_s17  ;;  %1207 = vperm.xlu0 %1882, %v1204_v11  }
 0x512   :  { %v1281_v43 = vpop.permute.xlu0 %1280 }
 0x514   :  { %1240 = vrot.lane.b32.xlu1 %v1080_v39, %s1897_s17 }
 0x516   :  { %v2887_v61 = vpop.permute.xlu0 %1326 }
 0x518   :  { %1238 = vrot.lane.b32.xlu1 %v1079_v32, %s1897_s17 }
 0x51a   :  { %v1311_v63 = vpop.permute.xlu0 %1310 }
 0x51c   :  { %1228 = vrot.lane.b32.xlu1 %v1061_v55, %s1897_s17 }
 0x51e   :  { %v2895_v1 = vpop.permute.xlu0 %1298 }
 0x520   :  { %1330 = vrot.lane.b32.xlu1 %v2746_v25, %s1897_s17 }
 0x522   :  { %v1283_v53 = vpop.permute.xlu0 %1282 }
 0x523   :  { %v1366_v42 = vsel %vm464_vm9, %v1281_v43, %v1283_v53 }
 0x524   :  { %1314 = vrot.lane.b32.xlu1 %v1179_v28, %s1897_s17  ;;  %v2957_v28 = vld [vmem:[%s3066_s7] sm:$0xff] }
 0x526   :  { %v2903_v5 = vpop.permute.xlu0 %1270 }
 0x528   :  { %1302 = vrot.lane.b32.xlu1 %v2755_v16, %s1897_s17 }
 0x52a   :  { %v1255_v15 = vpop.permute.xlu0 %1254 }
 0x52c   :  { %1334 = vrot.lane.b32.xlu1 %v2761_v47, %s1897_s17  ;;  %v1295_v47 = vpop.permute.xlu1 %1294 }
 0x52e   :  { %v1253_v25 = vpop.permute.xlu0 %1252 }
 0x52f   :  { %v1354_v45 = vsel %vm464_vm9, %v1253_v25, %v1255_v15 }
 0x530   :  { %1288 = vrot.lane.b32.xlu1 %v2767_v62, %s1897_s17 }
 0x532   :  { %v2914_v16 = vpop.permute.xlu0 %1242 }
 0x534   :  { %1320 = vrot.lane.b32.xlu1 %v2772_v50, %s1897_s17  ;;  %v1267_v50 = vpop.permute.xlu1 %1266 }
 0x536   :  { %v1227_v62 = vpop.permute.xlu0 %1226 }
 0x538   :  { %1274 = vrot.lane.b32.xlu1 %v2778_v10, %s1897_s17 }
 0x53a   :  { %v1329_v10 = vpop.permute.xlu0 %1328 }
 0x53c   :  { %1306 = vrot.lane.b32.xlu1 %v2783_v40, %s1897_s17 }
 0x53e   :  { %v1225_v40 = vpop.permute.xlu0 %1224 }
 0x540   :  { %1260 = vrot.lane.b32.xlu1 %v2791_v24, %s1897_s17 }
 0x542   :  { %v2924_v26 = vpop.permute.xlu0 %1316 }
 0x544   :  { %1292 = vrot.lane.b32.xlu1 %v2796_v33, %s1897_s17 }
 0x548   :  { %1246 = vrot.lane.b32.xlu1 %v2804_v4, %s1897_s17  ;;  %v1378_v4 = vsel %vm464_vm9, %v1309_v41, %v1311_v63  ;;  %v1342_v41 = vsel %vm464_vm9, %v1225_v40, %v1227_v62 }
 0x54c   :  { %1232 = vrot.lane.b32.xlu1 %v1063_v7, %s1897_s17 }
 0x550   :  { %1236 = vrot.lane.b32.xlu1 %v2788_v60, %s1897_s17 }
 0x554   :  { %1222 = vrot.lane.b32.xlu1 %v2630_v38, %s1897_s17  ;;  %v2929_v38 = vpop.permute.xlu0 %1300 }
 0x558   :  { %v1333_v57 = vpop.permute.xlu0 %1332 }
 0x55c   :  { %v1287_v34 = vpop.permute.xlu0 %1286 }
 0x560   :  { %v1319_v8 = vpop.permute.xlu0 %1318 }
 0x562   :  { %v2918_v23 = vpop.permute.xlu1 %1278 }
 0x564   :  { %v1273_v12 = vpop.permute.xlu0 %1272 }
 0x566   :  { %v2920_v24 = vpop.permute.xlu1 %1264 }
 0x568   :  { %v1305_v32 = vpop.permute.xlu0 %1304 }
 0x56a   :  { %v2922_v9 = vpop.permute.xlu1 %1250 }
 0x56e   :  { %v1325_v60 = vpop.permute.xlu1 %1324 }
 0x56f   :  { %v1384_v27 = vsel %vm464_vm9, %v1323_v29, %v1325_v60  ;;  %v1385_v33 = vsel %vm464_vm9, %v1325_v60, %v2887_v61 }
 0x570   :  { %1461 = vmatprep.subr.mxu0 %v1385_v33 }
 0x571   :  { %1462 = vmatpush1.msra.mxu0 %v1384_v27 }
 0x572   :  { %v1313_v21 = vpop.permute.xlu1 %1312 }
 0x573   :  { %v1379_v54 = vsel %vm464_vm9, %v1311_v63, %v1313_v21 }
 0x574   :  { %1463 = vmatprep.subr.mxu0 %v1379_v54 }
 0x575   :  { %1464 = vmatpush1.msra.mxu0 %v1378_v4 }
 0x576   :  { %v1297_v18 = vpop.permute.xlu1 %1296 }
 0x577   :  { %v1372_v58 = vsel %vm464_vm9, %v1295_v47, %v1297_v18  ;;  %v1373_v3 = vsel %vm464_vm9, %v1297_v18, %v2895_v1 }
 0x578   :  { %1465 = vmatprep.subr.mxu0 %v1373_v3 }
 0x579   :  { %1466 = vmatpush1.msra.mxu0 %v1372_v58 }
 0x57a   :  { %v1285_v7 = vpop.permute.xlu1 %1284 }
 0x57b   :  { %v1367_v13 = vsel %vm464_vm9, %v1283_v53, %v1285_v7  ;;  %v1386_v53 = vsel %vm464_vm9, %v2887_v61, %v1329_v10  ;;  %v1368_v33 = vsel %vm464_vm9, %v1285_v7, %v1287_v34 }
 0x57c   :  { %1467 = vmatprep.subr.mxu0 %v1367_v13 }
 0x57d   :  { %1468 = vmatpush1.msra.mxu0 %v1366_v42 }
 0x57e   :  { %v1269_v6 = vpop.permute.xlu1 %1268 }
 0x57f   :  { %v1360_v17 = vsel %vm464_vm9, %v1267_v50, %v1269_v6  ;;  %v1361_v30 = vsel %vm464_vm9, %v1269_v6, %v2903_v5 }
 0x580   :  { %1469 = vmatprep.subr.mxu0 %v1361_v30 }
 0x581   :  { %1470 = vmatpush1.msra.mxu0 %v1360_v17 }
 0x582   :  { %v2941_v59 = vpop.permute.xlu1 %1256 }
 0x583   :  { %v1355_v36 = vsel %vm464_vm9, %v1255_v15, %v2941_v59  ;;  %v1259_v15 = vpop.permute.xlu0 %1258 }
 0x584   :  { %1471 = vmatprep.subr.mxu0 %v1355_v36  ;;  %v1356_v6 = vsel %vm464_vm9, %v2941_v59, %v1259_v15 }
 0x585   :  { %1472 = vmatpush1.msra.mxu0 %v1354_v45 }
 0x586   :  { %v1241_v52 = vpop.permute.xlu1 %1240 }
 0x587   :  { %v1349_v35 = vsel %vm464_vm9, %v1241_v52, %v2914_v16  ;;  %v1291_v47 = vpop.permute.xlu0 %1290 }
 0x588   :  { %1473 = vmatprep.subr.mxu0 %v1349_v35 }
 0x58a   :  { %v1239_v11 = vpop.permute.xlu1 %1238 }
 0x58b   :  { %v1348_v46 = vsel %vm464_vm9, %v1239_v11, %v1241_v52  ;;  %v1245_v40 = vpop.permute.xlu0 %1244 }
 0x58c   :  { %1474 = vmatpush1.msra.mxu0 %v1348_v46 }
 0x58e   :  { %v2949_v39 = vpop.permute.xlu1 %1228 }
 0x58f   :  { %v1343_v55 = vsel %vm464_vm9, %v1227_v62, %v2949_v39  ;;  %v1374_v62 = vsel %vm464_vm9, %v2895_v1, %v2929_v38  ;;  %v1277_v54 = vpop.permute.xlu0 %1276 }
 0x590   :  { %1475 = vmatprep.subr.mxu0 %v1343_v55  ;;  %v1365_v36 = vsel %vm464_vm9, %v1277_v54, %v2918_v23 }
 0x591   :  { %1476 = vmatpush1.msra.mxu0 %v1342_v41  ;;  %v1339_v41 = vsel %vm464_vm9, %v2801_v56, %v2909_v44 }
 0x592   :  { %v1331_v43 = vpop.permute.xlu1 %1330  ;;  %1477 = vmatprep.subr.mxu0 %v2830_v22 }
 0x593   :  { %1478 = vmatpush1.msra.mxu0 %v2837_v14  ;;  %v1387_v63 = vsel %vm464_vm9, %v1329_v10, %v1331_v43  ;;  %v1388_v10 = vsel %vm464_vm9, %v1331_v43, %v1333_v57  ;;  %v1231_v58 = vpop.permute.xlu0 %1230 }
 0x594   :  { %1782 = vmatmul.mubr.msk.f32.vlgmr.msra.gmra.mxu0 %vm609_vm10, %v2957_v28  ;;  %1532 = vmatprep.subr.mxu1 %v1387_v63 }
 0x595   :  { %1533 = vmatpush1.msra.mxu1 %v1386_v53  ;;  %1653 = vmatprep.mubr.f32.mxu0 %v2450_v20 }
 0x596   :  { %v1315_v25 = vpop.permute.xlu1 %1314 }
 0x597   :  { %v1380_v29 = vsel %vm464_vm9, %v1313_v21, %v1315_v25  ;;  %v1381_v22 = vsel %vm464_vm9, %v1315_v25, %v2924_v26 }
 0x598   :  { %1534 = vmatprep.subr.mxu1 %v1381_v22  ;;  %v1660_v22 = vld [vmem:[%s3067_s2] sm:$0x3f] }
 0x599   :  { %1535 = vmatpush1.msra.mxu1 %v1380_v29 }
 0x59a   :  { %v1303_v14 = vpop.permute.xlu1 %1302 }
 0x59b   :  { %v1375_v61 = vsel %vm464_vm9, %v2929_v38, %v1303_v14  ;;  %v1382_v38 = vsel %vm464_vm9, %v2924_v26, %v1319_v8  ;;  %v1376_v13 = vsel %vm464_vm9, %v1303_v14, %v1305_v32  ;;  %v1263_v26 = vpop.permute.xlu0 %1262 }
 0x59c   :  { %1536 = vmatprep.subr.mxu1 %v1375_v61  ;;  %v1359_v35 = vsel %vm464_vm9, %v1263_v26, %v2920_v24 }
 0x59d   :  { %1537 = vmatpush1.msra.mxu1 %v1374_v62 }
 0x59e   :  { %v1335_v20 = vpop.permute.xlu1 %1334 }
 0x59f   :  { %v1389_v50 = vsel %vm464_vm9, %v1333_v57, %v1335_v20  ;;  %v1362_v57 = vsel %vm464_vm9, %v2903_v5, %v1273_v12  ;;  %v1673_v20 = vrot.slane %v1660_v22, %v909_v37  ;;  %v1685_v37 = vrot.slane %v1660_v22, %v921_v2 }
 0x5a0   :  { %1603 = vmatprep.subr.mxu0 %v1389_v50 }
 0x5a1   :  { %1604 = vmatpush1.msra.mxu0 %v1388_v10 }
 0x5a2   :  { %v1289_v60 = vpop.permute.xlu1 %1288 }
 0x5a3   :  { %v1369_v27 = vsel %vm464_vm9, %v1287_v34, %v1289_v60  ;;  %v1370_v30 = vsel %vm464_vm9, %v1289_v60, %v1291_v47 }
 0x5a4   :  { %1538 = vmatprep.subr.mxu1 %v1369_v27 }
 0x5a5   :  { %1539 = vmatpush1.msra.mxu1 %v1368_v33 }
 0x5a6   :  { %v1321_v21 = vpop.permute.xlu1 %1320 }
 0x5a7   :  { %v1383_v1 = vsel %vm464_vm9, %v1319_v8, %v1321_v21  ;;  %v1249_v8 = vpop.permute.xlu0 %1248 }
 0x5a8   :  { %1605 = vmatprep.subr.mxu0 %v1383_v1  ;;  %v1353_v23 = vsel %vm464_vm9, %v1249_v8, %v2922_v9  ;;  %v1681_v1 = vrot.slane %v1660_v22, %v917_v49 }
 0x5a9   :  { %1606 = vmatpush1.msra.mxu0 %v1382_v38 }
 0x5aa   :  { %v1275_v4 = vpop.permute.xlu1 %1274 }
 0x5ab   :  { %v1363_v18 = vsel %vm464_vm9, %v1273_v12, %v1275_v4  ;;  %v1364_v45 = vsel %vm464_vm9, %v1275_v4, %v1277_v54  ;;  %v1350_v12 = vsel %vm464_vm9, %v2914_v16, %v1245_v40  ;;  %v1235_v55 = vpop.permute.xlu0 %1234  ;;  %v1344_v16 = vsel %vm464_vm9, %v2949_v39, %v1231_v58 }
 0x5ac   :  { %1540 = vmatprep.subr.mxu1 %v1363_v18 }
 0x5ad   :  { %1541 = vmatpush1.msra.mxu1 %v1362_v57 }
 0x5ae   :  { %v1307_v3 = vpop.permute.xlu1 %1306 }
 0x5af   :  { %v1377_v7 = vsel %vm464_vm9, %v1305_v32, %v1307_v3  ;;  %v1221_v53 = vpop.permute.xlu0 %1220 }
 0x5b0   :  { %1607 = vmatprep.subr.mxu0 %v1377_v7  ;;  %v1340_v56 = vsel %vm464_vm9, %v2909_v44, %v1221_v53  ;;  %v1665_v44 = vrot.slane %v1660_v22, %v901_v0 }
 0x5b1   :  { %1608 = vmatpush1.msra.mxu0 %v1376_v13  ;;  %v1747_v13 = vld [vmem:[%s3068_s10] sm:$0xff] }
 0x5b2   :  { %v1261_v42 = vpop.permute.xlu1 %1260 }
 0x5b3   :  { %v1357_v34 = vsel %vm464_vm9, %v1259_v15, %v1261_v42  ;;  %v1358_v11 = vsel %vm464_vm9, %v1261_v42, %v1263_v26  ;;  %v1208_v29 = vpop.permute.xlu0 %1207 }
 0x5b4   :  { %1542 = vmatprep.subr.mxu1 %v1357_v34 }
 0x5b5   :  { %1543 = vmatpush1.msra.mxu1 %v1356_v6 }
 0x5b6   :  { %v1293_v5 = vpop.permute.xlu1 %1292 }
 0x5b7   :  { %v1371_v17 = vsel %vm464_vm9, %v1291_v47, %v1293_v5  ;;  %v1669_v47 = vrot.slane %v1660_v22, %v905_v19 }
 0x5b8   :  { %1609 = vmatprep.subr.mxu0 %v1371_v17 }
 0x5b9   :  { %1610 = vmatpush1.msra.mxu0 %v1370_v30 }
 0x5ba   :  { %v1247_v52 = vpop.permute.xlu1 %1246  ;;  %1611 = vmatprep.subr.mxu0 %v1365_v36 }
 0x5bb   :  { %1612 = vmatpush1.msra.mxu0 %v1364_v45  ;;  %v1351_v59 = vsel %vm464_vm9, %v1245_v40, %v1247_v52  ;;  %v1352_v46 = vsel %vm464_vm9, %v1247_v52, %v1249_v8  ;;  %v1677_v40 = vrot.slane %v1660_v22, %v913_v48 }
 0x5bc   :  { %1544 = vmatprep.subr.mxu1 %v1351_v59  ;;  %1613 = vmatprep.subr.mxu0 %v1359_v35 }
 0x5bd   :  { %1545 = vmatpush1.msra.mxu1 %v1350_v12  ;;  %1614 = vmatpush1.msra.mxu0 %v1358_v11 }
 0x5be   :  { %v1233_v32 = vpop.permute.xlu1 %1232  ;;  %1615 = vmatprep.subr.mxu0 %v1353_v23 }
 0x5bf   :  { %1616 = vmatpush1.msra.mxu0 %v1352_v46  ;;  %v1345_v24 = vsel %vm464_vm9, %v1231_v58, %v1233_v32  ;;  %v1346_v63 = vsel %vm464_vm9, %v1233_v32, %v1235_v55 }
 0x5c0   :  { %1546 = vmatprep.subr.mxu1 %v1345_v24 }
 0x5c1   :  { %1547 = vmatpush1.msra.mxu1 %v1344_v16 }
 0x5c2   :  { %v1237_v43 = vpop.permute.xlu1 %1236  ;;  %1548 = vmatprep.subr.mxu1 %v1339_v41 }
 0x5c3   :  { %1549 = vmatpush1.msra.mxu1 %v2808_v51  ;;  %v1347_v9 = vsel %vm464_vm9, %v1235_v55, %v1237_v43 }
 0x5c4   :  { %1783 = vmatmul.mubr.msk.f32.vlgmr.msra.gmra.mxu1 %vm609_vm10, %v2957_v28  ;;  %1617 = vmatprep.subr.mxu0 %v1347_v9 }
 0x5c5   :  { %1618 = vmatpush1.msra.mxu0 %v1346_v63 }
 0x5c6   :  { %v1223_v39 = vpop.permute.xlu1 %1222 }
 0x5c7   :  { %v1341_v15 = vsel %vm464_vm9, %v1221_v53, %v1223_v39  ;;  %v1734_v53 = vld [vmem:[%s3069_s9] sm:$0xff] }
 0x5c8   :  { %1619 = vmatprep.subr.mxu0 %v1341_v15 }
 0x5c9   :  { %1620 = vmatpush1.msra.mxu0 %v1340_v56 }
 0x5ca   :  { %1784 = vmatmul.mubr.msk.f32.vlgmr.msra.gmra.mxu0 %vm609_vm10, %v2957_v28 }
 0x654   :  { %v1513_v51 = vpop.f32.mrf.mxu0 }
 0x655   :  { %v1514_v61 = vadd.f32 %v1513_v51, %v1208_v29 }
 0x656   :  { %v1515_v25 = vpop.f32.mrf.mxu0 }
 0x657   :  { %v1516_v14 = vadd.f32 %v1515_v25, %v1208_v29  ;;  %v1692_v50 = vmul.f32 %v1665_v44, %v1514_v61 }
 0x659   :  { %v1693_v62 = vmul.f32 %v1669_v47, %v1516_v14 }
 0x65b   :  { %v1698_v27 = vadd.f32 %v1693_v62, %v1692_v50 }
 0x684   :  { %v1584_v28 = vpop.f32.mrf.mxu1 }
 0x685   :  { %v1585_v10 = vadd.f32 %v1584_v28, %v1208_v29 }
 0x686   :  { %v1586_v60 = vpop.f32.mrf.mxu1 }
 0x687   :  { %v1694_v33 = vmul.f32 %v1673_v20, %v1585_v10  ;;  %v1587_v21 = vadd.f32 %v1586_v60, %v1208_v29 }
 0x689   :  { %v1699_v54 = vadd.f32 %v1698_v27, %v1694_v33  ;;  %v1695_v19 = vmul.f32 %v1677_v40, %v1587_v21 }
 0x68a   :  { %v1655_v0 = vpop.f32.mrf.mxu0 }
 0x68b   :  { %v1656_v38 = vadd.f32 %v1655_v0, %v1208_v29  ;;  %v1700_v18 = vadd.f32 %v1699_v54, %v1695_v19 }
 0x68c   :  { %v1657_v4 = vpop.f32.mrf.mxu0 }
 0x68d   :  { %v1696_v57 = vmul.f32 %v1681_v1, %v1656_v38  ;;  %v1658_v58 = vadd.f32 %v1657_v4, %v1208_v29 }
 0x68f   :  { %v1701_v3 = vadd.f32 %v1700_v18, %v1696_v57  ;;  %v1697_v48 = vmul.f32 %v1685_v37, %v1658_v58 }
 0x691   :  { %v1702_v7 = vadd.f32 %v1701_v3, %v1697_v48 }
 0x693   :  { %1703 = vadd.xlane.f32.xlu1 %v1702_v7 }
 0x6a4   :  { %1750 = vperm.xlu1 %1881, %v1747_v13  }
 0x71c   :  { %v1704_v42 = vpop.xlane.xlu1 %1703 }
 0x71d   :  { %v1705_v49 = vmul.f32 0.001953125, %v1704_v42 }
 0x71f   :  { %v1706_v26 = vsub.f32 %v1514_v61, %v1705_v49  ;;  %v1707_v34 = vsub.f32 %v1516_v14, %v1705_v49  ;;  %v1708_v6 = vsub.f32 %v1585_v10, %v1705_v49  ;;  %v1709_v31 = vsub.f32 %v1587_v21, %v1705_v49 }
 0x720   :  { %v1710_v2 = vsub.f32 %v1656_v38, %v1705_v49  ;;  %v1711_v8 = vsub.f32 %v1658_v58, %v1705_v49  ;;  %v1751_v14 = vpop.permute.xlu1 %1750 }
 0x721   :  { %v1712_v5 = vmul.f32 %v1706_v26, %v1665_v44  ;;  %v1713_v17 = vmul.f32 %v1707_v34, %v1669_v47  ;;  %v1714_v30 = vmul.f32 %v1708_v6, %v1673_v20  ;;  %v1715_v36 = vmul.f32 %v1709_v31, %v1677_v40 }
 0x722   :  { %v1716_v59 = vmul.f32 %v1710_v2, %v1681_v1  ;;  %v1717_v11 = vmul.f32 %v1711_v8, %v1685_v37 }
 0x723   :  { %v1718_v45 = vmul.f32 %v1712_v5, %v1712_v5  ;;  %v1719_v52 = vmul.f32 %v1713_v17, %v1713_v17  ;;  %v1720_v35 = vmul.f32 %v1714_v30, %v1714_v30  ;;  %v1721_v23 = vmul.f32 %v1715_v36, %v1715_v36 }
 0x724   :  { %v1722_v32 = vmul.f32 %v1716_v59, %v1716_v59  ;;  %v1723_v24 = vmul.f32 %v1717_v11, %v1717_v11 }
 0x725   :  { %v1724_v12 = vadd.f32 %v1719_v52, %v1718_v45 }
 0x727   :  { %v1725_v46 = vadd.f32 %v1724_v12, %v1720_v35 }
 0x729   :  { %v1726_v55 = vadd.f32 %v1725_v46, %v1721_v23 }
 0x72b   :  { %v1727_v16 = vadd.f32 %v1726_v55, %v1722_v32 }
 0x72d   :  { %v1728_v41 = vadd.f32 %v1727_v16, %v1723_v24 }
 0x72f   :  { %1729 = vadd.xlane.f32.xlu0 %v1728_v41 }
 0x7b8   :  { %v1730_v43 = vpop.xlane.xlu0 %1729 }
 0x7b9   :  { %v1731_v9 = vmul.f32 0.001953125, %v1730_v43 }
 0x7bb   :  { %v1732_v63 = vadd.f32 1e-05, %v1731_v9 }
 0x7bd   :  { %1885 = vrsqrt.f32 %v1732_v63 }
 0x7ca   :  { %v1886_v39 = vpop.eup %1885 }
 0x7cb   :  { %v1735_v15 = vmul.f32 %v1886_v39, %v1734_v53 }
 0x7cd   :  { %1738 = vperm.xlu0 %1882, %v1735_v15  }
 0x848   :  { %v1739_v56 = vpop.permute.xlu0 %1738 }
 0x849   :  { %v1741_v51 = vmul.f32 %v1739_v56, %v1712_v5  ;;  %v1742_v25 = vmul.f32 %v1739_v56, %v1713_v17  ;;  %v1743_v29 = vmul.f32 %v1739_v56, %v1714_v30  ;;  %v1744_v22 = vmul.f32 %v1739_v56, %v1715_v36 }
 0x84a   :  { %v1745_v47 = vmul.f32 %v1739_v56, %v1716_v59  ;;  %v1746_v61 = vmul.f32 %v1739_v56, %v1717_v11 }
 0x84b   :  { %v1753_v44 = vadd.f32 %v1751_v14, %v1741_v51  ;;  %v1754_v62 = vadd.f32 %v1751_v14, %v1742_v25  ;;  %v1755_v20 = vadd.f32 %v1751_v14, %v1743_v29  ;;  %v1756_v28 = vadd.f32 %v1751_v14, %v1744_v22 }
 0x84c   :  { %v1757_v50 = vadd.f32 %v1751_v14, %v1745_v47  ;;  %v1758_v10 = vadd.f32 %v1751_v14, %v1746_v61 }
 0x84d   :  { %v1759_v40 = vmax.f32 %v1753_v44, 0.0  ;;  %v1760_v60 = vmax.f32 %v1754_v62, 0.0  ;;  %v1761_v27 = vmax.f32 %v1755_v20, 0.0  ;;  %v1762_v33 = vmax.f32 %v1756_v28, 0.0 }
 0x84e   :  { %v1763_v21 = vmax.f32 %v1757_v50, 0.0  ;;  %v1764_v54 = vmax.f32 %v1758_v10, 0.0 }
 0x84f   :  { %1765 = vst [vmem:[%s3070_s11] sm:$0xff] %v1759_v40  ;;  %1766 = vst [vmem:[%s3070_s11 + $0x8] sm:$0xff] %v1760_v60 }
 0x850   :  { %1767 = vst [vmem:[%s3070_s11 + $0x10] sm:$0xff] %v1761_v27  ;;  %1768 = vst [vmem:[%s3070_s11 + $0x18] sm:$0xff] %v1762_v33 }
 0x851   :  { %1769 = vst [vmem:[%s3070_s11 + $0x20] sm:$0xff] %v1763_v21  ;;  %1770 = vst [vmem:[%s3070_s11 + $0x28] sm:$0xff] %v1764_v54 }

</bundles_post_ra>
